<compile_context>
chip_gen: v7x
topology: tpu7x:2x2x1
jax: 0.10.0
libtpu: 0.0.40
codegen_flags: <defaults>
</compile_context>

<pallas_src>
import functools

import jax
import jax.numpy as jnp
from jax.experimental import pallas as pl
from jax.experimental.pallas import tpu as pltpu

# ----- model hyper-parameters (small, consistent with the module) -----
VOCAB = 1000          # shrunk from 15000 for a quick synthetic run
E = 256               # embedding_dim
C = 128               # conv out_channels
K = 15                # conv kernel_size
H = 32                # hidden_size (num_layers fixed to 2 below)
NUM_CLASS = 2
FC1 = 256
FC2 = 512
OUT_PAD = 128         # lane-dense padded logit width (>= NUM_CLASS)

B = 2                 # batch
L = 30                # sequence length -> conv output length L - K + 1 = 16


# ----------------------------------------------------------------------
# Single fused kernel: gated conv (im2col matmul) + mean pool
#                      + 2-layer 1-step LSTM + fc1/fc2/fc3
# ----------------------------------------------------------------------
def gcnn_lstm_kernel(xcol_ref, wcol_ref, cb_ref,
                     wih0_ref, b0_ref, wih1_ref, b1_ref,
                     fw1_ref, fb1_ref, fw2_ref, fb2_ref, fw3_ref, fb3_ref,
                     out_ref, *, bsz, lo):
    # --- gated conv: one bf16 MXU matmul, (B*lo, K*E) @ (K*E, 2C) -> f32 ---
    acc = jnp.dot(xcol_ref[...], wcol_ref[...],
                  preferred_element_type=jnp.float32) + cb_ref[...]
    a = acc[:, :C]                              # conv_A output, (B*lo, C)
    b = acc[:, C:]                              # conv_B output
    a = jnp.maximum(a, 0.0) + a                 # relu(A) + A
    b = jnp.maximum(b, 0.0) + b                 # relu(B) + B
    g = a * jax.nn.sigmoid(b)                   # gated linear unit

    # --- mean over conv positions -> (B, C). Static per-row slices keep the
    #     reduction a plain 2-D sublane reduce (no 3-D reshape needed). ---
    feat = jnp.concatenate(
        [jnp.mean(g[i * lo:(i + 1) * lo, :], axis=0, keepdims=True)
         for i in range(bsz)], axis=0)

    # --- 2-layer LSTM, single time step with h0 = c0 = 0.
    #     W_hh @ h0 == 0 and f * c0 == 0, so only W_ih and the summed bias
    #     (b_ih + b_hh) matter.  Valid ONLY for this 1-step / zero-state case.
    def lstm_step(x, w_ih_ref, bias_ref):
        gates = jnp.dot(x, w_ih_ref[...],
                        preferred_element_type=jnp.float32) + bias_ref[...]
        sg = jax.nn.sigmoid(gates)              # full 128-lane EUP pass
        th = jnp.tanh(gates)
        i_g = sg[:, 0 * H:1 * H]                # input gate
        g_g = th[:, 2 * H:3 * H]                # cell candidate
        o_g = sg[:, 3 * H:4 * H]                # output gate
        return o_g * jnp.tanh(i_g * g_g)        # h = o * tanh(c), c = i * g

    h = lstm_step(feat, wih0_ref, b0_ref)
    h = lstm_step(h, wih1_ref, b1_ref)

    # --- bare linear chain fc1 -> fc2 -> fc3 (as in the PyTorch module) ---
    y = jnp.dot(h, fw1_ref[...], preferred_element_type=jnp.float32) + fb1_ref[...]
    y = jnp.dot(y, fw2_ref[...], preferred_element_type=jnp.float32) + fb2_ref[...]
    y = jnp.dot(y, fw3_ref[...], preferred_element_type=jnp.float32) + fb3_ref[...]
    out_ref[...] = y                            # (B, 128); lanes >= NUM_CLASS carry zero weights


# ----------------------------------------------------------------------
# Wrapper: embedding gather + im2col layout + weight fusion + pallas_call
# ----------------------------------------------------------------------
def _prepare_kernel_params(params):
    """Fuse / pad weights into the kernel layout (cheap, runs under jit)."""
    wcol = jnp.concatenate([params["wa"], params["wb"]], axis=-1)      # (K, E, 2C) bf16
    wcol = wcol.reshape(K * E, 2 * C)                                  # (K*E, 2C)
    cb = jnp.concatenate([params["cba"], params["cbb"]], axis=-1)      # (1, 2C) f32
    fw3p = jnp.pad(params["fw3"], ((0, 0), (0, OUT_PAD - NUM_CLASS)))  # (FC2, 128) bf16
    fb3p = jnp.pad(params["fb3"], ((0, 0), (0, OUT_PAD - NUM_CLASS)))  # (1, 128) f32
    return wcol, cb, fw3p, fb3p


@jax.jit
def gcnn_lstm_forward(word_index, params):
    # TODO(synk): the embedding-table gather stays in plain JAX; a gather-DMA
    # Pallas kernel is not worth it at this problem size.
    emb = jnp.take(params["emb"], word_index, axis=0)                  # (B, L, E) bf16
    bsz, seq_len, _ = emb.shape
    lo = seq_len - K + 1

    # im2col layout plumbing: X[b*lo + p, k*E + e] = emb[b, p + k, e]
    taps = jnp.stack([emb[:, k:k + lo, :] for k in range(K)], axis=2)  # (B, lo, K, E)
    xcol = taps.reshape(bsz * lo, K * E)                               # (B*lo, K*E) bf16

    wcol, cb, fw3p, fb3p = _prepare_kernel_params(params)

    vmem = pl.BlockSpec(memory_space=pltpu.MemorySpace.VMEM)
    args = (xcol, wcol, cb,
            params["wih0"], params["b0"], params["wih1"], params["b1"],
            params["fw1"], params["fb1"], params["fw2"], params["fb2"],
            fw3p, fb3p)
    y = pl.pallas_call(
        functools.partial(gcnn_lstm_kernel, bsz=bsz, lo=lo),
        out_shape=jax.ShapeDtypeStruct((bsz, OUT_PAD), jnp.float32),
        in_specs=[vmem] * len(args),
        out_specs=vmem,
    )(*args)
    return y[:, :NUM_CLASS]


# ----------------------------------------------------------------------
# Pure-JAX reference (direct per-tap conv, same dtypes) for a sanity check
# ----------------------------------------------------------------------
@jax.jit
def reference_forward(word_index, params):
    emb = jnp.take(params["emb"], word_index, axis=0)                  # (B, L, E) bf16
    bsz, seq_len, _ = emb.shape
    lo = seq_len - K + 1

    a = jnp.zeros((bsz, lo, C), jnp.float32) + params["cba"]
    b = jnp.zeros((bsz, lo, C), jnp.float32) + params["cbb"]
    for k in range(K):
        xk = emb[:, k:k + lo, :]
        a = a + jnp.einsum("ble,ec->blc", xk, params["wa"][k],
                           preferred_element_type=jnp.float32)
        b = b + jnp.einsum("ble,ec->blc", xk, params["wb"][k],
                           preferred_element_type=jnp.float32)
    a = jnp.maximum(a, 0.0) + a
    b = jnp.maximum(b, 0.0) + b
    feat = jnp.mean(a * jax.nn.sigmoid(b), axis=1)                     # (B, C) f32

    def lstm_step(x, w, bias):
        gates = jnp.dot(x, w, preferred_element_type=jnp.float32) + bias
        i = jax.nn.sigmoid(gates[:, 0 * H:1 * H])
        g = jnp.tanh(gates[:, 2 * H:3 * H])
        o = jax.nn.sigmoid(gates[:, 3 * H:4 * H])
        return o * jnp.tanh(i * g)

    h = lstm_step(feat, params["wih0"], params["b0"])
    h = lstm_step(h, params["wih1"], params["b1"])
    y = jnp.dot(h, params["fw1"], preferred_element_type=jnp.float32) + params["fb1"]
    y = jnp.dot(y, params["fw2"], preferred_element_type=jnp.float32) + params["fb2"]
    y = jnp.dot(y, params["fw3"], preferred_element_type=jnp.float32) + params["fb3"]
    return y


# ----------------------------------------------------------------------
def make_params(key):
    ks = jax.random.split(key, 16)
    scale = lambda fan_in: (2.0 / fan_in) ** 0.5
    bf, f32 = jnp.bfloat16, jnp.float32
    return {
        # embedding (kaiming-normal-style init), stored bf16
        "emb": (jax.random.normal(ks[0], (VOCAB, E), f32) * scale(E)).astype(bf),
        # conv weights stored as (K, E, C) == torch (C, E, K) permuted, bf16
        "wa": (jax.random.normal(ks[1], (K, E, C), f32) * scale(E * K)).astype(bf),
        "cba": jax.random.normal(ks[2], (1, C), f32) * 0.01,
        "wb": (jax.random.normal(ks[3], (K, E, C), f32) * scale(E * K)).astype(bf),
        "cbb": jax.random.normal(ks[4], (1, C), f32) * 0.01,
        # LSTM: W_ih stored transposed (in, 4H) bf16; bias = b_ih + b_hh (f32)
        "wih0": (jax.random.normal(ks[5], (C, 4 * H), f32) * scale(C)).astype(bf),
        "b0": jax.random.normal(ks[6], (1, 4 * H), f32) * 0.01,
        "wih1": (jax.random.normal(ks[7], (H, 4 * H), f32) * scale(H)).astype(bf),
        "b1": jax.random.normal(ks[8], (1, 4 * H), f32) * 0.01,
        # fully-connected heads (stored transposed: (in, out)), bf16 weights
        "fw1": (jax.random.normal(ks[9], (H, FC1), f32) * scale(H)).astype(bf),
        "fb1": jax.random.normal(ks[10], (1, FC1), f32) * 0.01,
        "fw2": (jax.random.normal(ks[11], (FC1, FC2), f32) * scale(FC1)).astype(bf),
        "fb2": jax.random.normal(ks[12], (1, FC2), f32) * 0.01,
        "fw3": (jax.random.normal(ks[13], (FC2, NUM_CLASS), f32) * scale(FC2)).astype(bf),
        "fb3": jax.random.normal(ks[14], (1, NUM_CLASS), f32) * 0.01,
    }


if __name__ == "__main__":
    key = jax.random.PRNGKey(0)
    pkey, ikey = jax.random.split(key)
    params = make_params(pkey)
    word_index = jax.random.randint(ikey, (B, L), 0, VOCAB, dtype=jnp.int32)

    out = jax.block_until_ready(gcnn_lstm_forward(word_index, params))
    ref = jax.block_until_ready(reference_forward(word_index, params))

    assert out.shape == (B, NUM_CLASS), out.shape
    assert jnp.allclose(out, ref, atol=1e-2, rtol=1e-2), (out, ref)
    print("KERNEL_OK")
</pallas_src>

<mosaic_0001>
module attributes {stable_mosaic.version = 11 : i64} {
  func.func @gcnn_lstm_kernel(%arg0: memref<32x3840xbf16, #tpu.memory_space<vmem>>, %arg1: memref<3840x256xbf16, #tpu.memory_space<vmem>>, %arg2: memref<1x256xf32, #tpu.memory_space<vmem>>, %arg3: memref<128x128xbf16, #tpu.memory_space<vmem>>, %arg4: memref<1x128xf32, #tpu.memory_space<vmem>>, %arg5: memref<32x128xbf16, #tpu.memory_space<vmem>>, %arg6: memref<1x128xf32, #tpu.memory_space<vmem>>, %arg7: memref<32x256xbf16, #tpu.memory_space<vmem>>, %arg8: memref<1x256xf32, #tpu.memory_space<vmem>>, %arg9: memref<256x512xbf16, #tpu.memory_space<vmem>>, %arg10: memref<1x512xf32, #tpu.memory_space<vmem>>, %arg11: memref<512x128xbf16, #tpu.memory_space<vmem>>, %arg12: memref<1x128xf32, #tpu.memory_space<vmem>>, %arg13: memref<2x128xf32, #tpu.memory_space<vmem>>) attributes {dimension_semantics = [], scalar_prefetch = 0 : i64, scratch_operands = 0 : i64, tpu.core_type = #tpu.core_type<tc>} {
    %c0 = arith.constant 0 : index
    %c0_0 = arith.constant 0 : index
    %0 = vector.load %arg0[%c0, %c0_0] : memref<32x3840xbf16, #tpu.memory_space<vmem>>, vector<32x3840xbf16>
    %c0_1 = arith.constant 0 : index
    %c0_2 = arith.constant 0 : index
    %1 = vector.load %arg1[%c0_1, %c0_2] : memref<3840x256xbf16, #tpu.memory_space<vmem>>, vector<3840x256xbf16>
    %cst = arith.constant dense<0.000000e+00> : vector<32x256xf32>
    %2 = tpu.matmul %0, %1, %cst {dimension_numbers = #tpu.dot_dimension_numbers<[1], [0], [0], [1], [0, 0, 1, 1], [], []>} : vector<32x3840xbf16>, vector<3840x256xbf16>, vector<32x256xf32> -> vector<32x256xf32>
    %c0_3 = arith.constant 0 : index
    %c0_4 = arith.constant 0 : index
    %3 = vector.load %arg2[%c0_3, %c0_4] : memref<1x256xf32, #tpu.memory_space<vmem>>, vector<1x256xf32>
    %4 = vector.broadcast %3 : vector<1x256xf32> to vector<32x256xf32>
    %5 = arith.addf %2, %4 : vector<32x256xf32>
    %6 = vector.extract_strided_slice %5 {offsets = [0, 0], sizes = [32, 128], strides = [1, 1]} : vector<32x256xf32> to vector<32x128xf32>
    %7 = vector.extract_strided_slice %5 {offsets = [0, 128], sizes = [32, 128], strides = [1, 1]} : vector<32x256xf32> to vector<32x128xf32>
    %cst_5 = arith.constant 0.000000e+00 : f32
    %8 = vector.broadcast %cst_5 : f32 to vector<32x128xf32>
    %9 = arith.maximumf %6, %8 : vector<32x128xf32>
    %10 = arith.addf %9, %6 : vector<32x128xf32>
    %cst_6 = arith.constant 0.000000e+00 : f32
    %11 = vector.broadcast %cst_6 : f32 to vector<32x128xf32>
    %12 = arith.maximumf %7, %11 : vector<32x128xf32>
    %13 = arith.addf %12, %7 : vector<32x128xf32>
    %14 = arith.negf %13 : vector<32x128xf32>
    %15 = math.exp %14 : vector<32x128xf32>
    %cst_7 = arith.constant 1.000000e+00 : f32
    %16 = vector.broadcast %cst_7 : f32 to vector<32x128xf32>
    %17 = arith.addf %16, %15 : vector<32x128xf32>
    %18 = arith.divf %16, %17 : vector<32x128xf32>
    %19 = arith.mulf %10, %18 : vector<32x128xf32>
    %20 = vector.extract_strided_slice %19 {offsets = [0, 0], sizes = [16, 128], strides = [1, 1]} : vector<32x128xf32> to vector<16x128xf32>
    %cst_8 = arith.constant dense<0.000000e+00> : vector<128xf32>
    %21 = vector.multi_reduction <add>, %20, %cst_8 [0] : vector<16x128xf32> to vector<128xf32>
    %22 = vector.shape_cast %21 : vector<128xf32> to vector<1x128xf32>
    %cst_9 = arith.constant 1.600000e+01 : f32
    %23 = vector.broadcast %cst_9 : f32 to vector<1x128xf32>
    %24 = arith.divf %22, %23 : vector<1x128xf32>
    %25 = vector.extract_strided_slice %19 {offsets = [16, 0], sizes = [16, 128], strides = [1, 1]} : vector<32x128xf32> to vector<16x128xf32>
    %cst_10 = arith.constant dense<0.000000e+00> : vector<128xf32>
    %26 = vector.multi_reduction <add>, %25, %cst_10 [0] : vector<16x128xf32> to vector<128xf32>
    %27 = vector.shape_cast %26 : vector<128xf32> to vector<1x128xf32>
    %cst_11 = arith.constant 1.600000e+01 : f32
    %28 = vector.broadcast %cst_11 : f32 to vector<1x128xf32>
    %29 = arith.divf %27, %28 : vector<1x128xf32>
    %30 = tpu.concatenate %24, %29 in 0 : vector<1x128xf32>, vector<1x128xf32> -> vector<2x128xf32>
    %c0_12 = arith.constant 0 : index
    %c0_13 = arith.constant 0 : index
    %31 = vector.load %arg3[%c0_12, %c0_13] : memref<128x128xbf16, #tpu.memory_space<vmem>>, vector<128x128xbf16>
    %cst_14 = arith.constant dense<0.000000e+00> : vector<2x128xf32>
    %32 = tpu.matmul %30, %31, %cst_14 {dimension_numbers = #tpu.dot_dimension_numbers<[1], [0], [0], [1], [0, 0, 1, 1], [], []>} : vector<2x128xf32>, vector<128x128xbf16>, vector<2x128xf32> -> vector<2x128xf32>
    %c0_15 = arith.constant 0 : index
    %c0_16 = arith.constant 0 : index
    %33 = vector.load %arg4[%c0_15, %c0_16] : memref<1x128xf32, #tpu.memory_space<vmem>>, vector<1x128xf32>
    %34 = vector.broadcast %33 : vector<1x128xf32> to vector<2x128xf32>
    %35 = arith.addf %32, %34 : vector<2x128xf32>
    %36 = arith.negf %35 : vector<2x128xf32>
    %37 = math.exp %36 : vector<2x128xf32>
    %cst_17 = arith.constant 1.000000e+00 : f32
    %38 = vector.broadcast %cst_17 : f32 to vector<2x128xf32>
    %39 = arith.addf %38, %37 : vector<2x128xf32>
    %40 = arith.divf %38, %39 : vector<2x128xf32>
    %41 = math.tanh %35 : vector<2x128xf32>
    %42 = vector.extract_strided_slice %40 {offsets = [0, 0], sizes = [2, 32], strides = [1, 1]} : vector<2x128xf32> to vector<2x32xf32>
    %43 = vector.extract_strided_slice %41 {offsets = [0, 64], sizes = [2, 32], strides = [1, 1]} : vector<2x128xf32> to vector<2x32xf32>
    %44 = vector.extract_strided_slice %40 {offsets = [0, 96], sizes = [2, 32], strides = [1, 1]} : vector<2x128xf32> to vector<2x32xf32>
    %45 = arith.mulf %42, %43 : vector<2x32xf32>
    %46 = math.tanh %45 : vector<2x32xf32>
    %47 = arith.mulf %44, %46 : vector<2x32xf32>
    %c0_18 = arith.constant 0 : index
    %c0_19 = arith.constant 0 : index
    %48 = vector.load %arg5[%c0_18, %c0_19] : memref<32x128xbf16, #tpu.memory_space<vmem>>, vector<32x128xbf16>
    %cst_20 = arith.constant dense<0.000000e+00> : vector<2x128xf32>
    %49 = tpu.matmul %47, %48, %cst_20 {dimension_numbers = #tpu.dot_dimension_numbers<[1], [0], [0], [1], [0, 0, 1, 1], [], []>} : vector<2x32xf32>, vector<32x128xbf16>, vector<2x128xf32> -> vector<2x128xf32>
    %c0_21 = arith.constant 0 : index
    %c0_22 = arith.constant 0 : index
    %50 = vector.load %arg6[%c0_21, %c0_22] : memref<1x128xf32, #tpu.memory_space<vmem>>, vector<1x128xf32>
    %51 = vector.broadcast %50 : vector<1x128xf32> to vector<2x128xf32>
    %52 = arith.addf %49, %51 : vector<2x128xf32>
    %53 = arith.negf %52 : vector<2x128xf32>
    %54 = math.exp %53 : vector<2x128xf32>
    %cst_23 = arith.constant 1.000000e+00 : f32
    %55 = vector.broadcast %cst_23 : f32 to vector<2x128xf32>
    %56 = arith.addf %55, %54 : vector<2x128xf32>
    %57 = arith.divf %55, %56 : vector<2x128xf32>
    %58 = math.tanh %52 : vector<2x128xf32>
    %59 = vector.extract_strided_slice %57 {offsets = [0, 0], sizes = [2, 32], strides = [1, 1]} : vector<2x128xf32> to vector<2x32xf32>
    %60 = vector.extract_strided_slice %58 {offsets = [0, 64], sizes = [2, 32], strides = [1, 1]} : vector<2x128xf32> to vector<2x32xf32>
    %61 = vector.extract_strided_slice %57 {offsets = [0, 96], sizes = [2, 32], strides = [1, 1]} : vector<2x128xf32> to vector<2x32xf32>
    %62 = arith.mulf %59, %60 : vector<2x32xf32>
    %63 = math.tanh %62 : vector<2x32xf32>
    %64 = arith.mulf %61, %63 : vector<2x32xf32>
    %c0_24 = arith.constant 0 : index
    %c0_25 = arith.constant 0 : index
    %65 = vector.load %arg7[%c0_24, %c0_25] : memref<32x256xbf16, #tpu.memory_space<vmem>>, vector<32x256xbf16>
    %cst_26 = arith.constant dense<0.000000e+00> : vector<2x256xf32>
    %66 = tpu.matmul %64, %65, %cst_26 {dimension_numbers = #tpu.dot_dimension_numbers<[1], [0], [0], [1], [0, 0, 1, 1], [], []>} : vector<2x32xf32>, vector<32x256xbf16>, vector<2x256xf32> -> vector<2x256xf32>
    %c0_27 = arith.constant 0 : index
    %c0_28 = arith.constant 0 : index
    %67 = vector.load %arg8[%c0_27, %c0_28] : memref<1x256xf32, #tpu.memory_space<vmem>>, vector<1x256xf32>
    %68 = vector.broadcast %67 : vector<1x256xf32> to vector<2x256xf32>
    %69 = arith.addf %66, %68 : vector<2x256xf32>
    %c0_29 = arith.constant 0 : index
    %c0_30 = arith.constant 0 : index
    %70 = vector.load %arg9[%c0_29, %c0_30] : memref<256x512xbf16, #tpu.memory_space<vmem>>, vector<256x512xbf16>
    %cst_31 = arith.constant dense<0.000000e+00> : vector<2x512xf32>
    %71 = tpu.matmul %69, %70, %cst_31 {dimension_numbers = #tpu.dot_dimension_numbers<[1], [0], [0], [1], [0, 0, 1, 1], [], []>} : vector<2x256xf32>, vector<256x512xbf16>, vector<2x512xf32> -> vector<2x512xf32>
    %c0_32 = arith.constant 0 : index
    %c0_33 = arith.constant 0 : index
    %72 = vector.load %arg10[%c0_32, %c0_33] : memref<1x512xf32, #tpu.memory_space<vmem>>, vector<1x512xf32>
    %73 = vector.broadcast %72 : vector<1x512xf32> to vector<2x512xf32>
    %74 = arith.addf %71, %73 : vector<2x512xf32>
    %c0_34 = arith.constant 0 : index
    %c0_35 = arith.constant 0 : index
    %75 = vector.load %arg11[%c0_34, %c0_35] : memref<512x128xbf16, #tpu.memory_space<vmem>>, vector<512x128xbf16>
    %cst_36 = arith.constant dense<0.000000e+00> : vector<2x128xf32>
    %76 = tpu.matmul %74, %75, %cst_36 {dimension_numbers = #tpu.dot_dimension_numbers<[1], [0], [0], [1], [0, 0, 1, 1], [], []>} : vector<2x512xf32>, vector<512x128xbf16>, vector<2x128xf32> -> vector<2x128xf32>
    %c0_37 = arith.constant 0 : index
    %c0_38 = arith.constant 0 : index
    %77 = vector.load %arg12[%c0_37, %c0_38] : memref<1x128xf32, #tpu.memory_space<vmem>>, vector<1x128xf32>
    %78 = vector.broadcast %77 : vector<1x128xf32> to vector<2x128xf32>
    %79 = arith.addf %76, %78 : vector<2x128xf32>
    %c0_39 = arith.constant 0 : index
    %c0_40 = arith.constant 0 : index
    %80 = vector.load %arg13[%c0_39, %c0_40] : memref<2x128xf32, #tpu.memory_space<vmem>>, vector<2x128xf32>
    tpu.vector_store %arg13[%c0_39, %c0_40], %79 {strides = array<i32>} : memref<2x128xf32, #tpu.memory_space<vmem>>, vector<2x128xf32>,
    return
  }
}

</mosaic_0001>

<bundles_post_ra>
// kernel: gcnn_lstm_forward.1
= control target key start
LH: loop header
LB: loop body
LE: loop exit
PB: predicated region body
PF: predicated region fallthrough
CT: control target
= control target key end

     0   :  { %s9256_s0 = inlined_call_operand.vmem [shape: bf16[32,3840], index: 0, kind: input, shape index: {}]   ;;  %s9257_s1 = inlined_call_operand.vmem [shape: bf16[3840,256], index: 1, kind: input, shape index: {}]   ;;  %s9258_s2 = inlined_call_operand.vmem [shape: f32[1,256], index: 2, kind: input, shape index: {}]   ;;  %s9259_s3 = inlined_call_operand.vmem [shape: bf16[128,128], index: 3, kind: input, shape index: {}]   ;;  %s9260_s4 = inlined_call_operand.vmem [shape: f32[1,128], index: 4, kind: input, shape index: {}]   ;;  %s9261_s5 = inlined_call_operand.vmem [shape: bf16[32,128], index: 5, kind: input, shape index: {}]   ;;  %s9262_s6 = inlined_call_operand.vmem [shape: f32[1,128], index: 6, kind: input, shape index: {}]   ;;  %s9263_s7 = inlined_call_operand.vmem [shape: bf16[32,256], index: 7, kind: input, shape index: {}]   ;;  %s9264_s8 = inlined_call_operand.vmem [shape: f32[1,256], index: 8, kind: input, shape index: {}]   ;;  %s9265_s9 = inlined_call_operand.vmem [shape: bf16[256,512], index: 9, kind: input, shape index: {}]   ;;  %s9266_s10 = inlined_call_operand.vmem [shape: f32[1,512], index: 10, kind: input, shape index: {}]   ;;  %s9267_s11 = inlined_call_operand.vmem [shape: bf16[512,128], index: 11, kind: input, shape index: {}]   ;;  %s9268_s12 = inlined_call_operand.vmem [shape: f32[1,128], index: 12, kind: input, shape index: {}]   ;;  %s9269_s13 = inlined_call_operand.hbm [shape: f32[2,128], index: 13, kind: output, shape index: {}]  }
   0x1   :  { %v6149_v0 = vld [vmem:[%s9257_s1 + $0x4] ss:$8 sps:$4 sm:$0xff]   ;;  %v6153_v2 = vld [vmem:[%s9257_s1] ss:$8 sps:$4 sm:$0xff]   ;;  %v6155_v4 = vld [vmem:[%s9257_s1 + $0x14] ss:$8 sps:$4 sm:$0xff]  }
   0x2   :  { %v6151_v1 = vld [vmem:[%s9257_s1 + $0x604] ss:$8 sps:$4 sm:$0xff]   ;;  %3298 = vmatprep.subr.bf16.mxu1 %v6149_v0  ;;  %v6154_v3 = vld [vmem:[%s9257_s1 + $0x600] ss:$8 sps:$4 sm:$0xff]   ;;  %v6157_v5 = vld [vmem:[%s9257_s1 + $0x614] ss:$8 sps:$4 sm:$0xff]  }
   0x3   :  { %3616 = vmatprep.subr.bf16.mxu0 %v6151_v1  ;;  %3299 = vmatpush1.bf16.msra.mxu1 %v6153_v2  ;;  %v6159_v6 = vld [vmem:[%s9257_s1 + $0x10] ss:$8 sps:$4 sm:$0xff]   ;;  %v6161_v8 = vld [vmem:[%s9257_s1 + $0x24] ss:$8 sps:$4 sm:$0xff]   ;;  %v6165_v10 = vld [vmem:[%s9257_s1 + $0x20] ss:$8 sps:$4 sm:$0xff]  }
   0x4   :  { %3617 = vmatpush1.bf16.msra.mxu0 %v6154_v3  ;;  %3300 = vmatprep.subr.bf16.mxu1 %v6155_v4  ;;  %v6160_v7 = vld [vmem:[%s9257_s1 + $0x610] ss:$8 sps:$4 sm:$0xff]   ;;  %v6163_v9 = vld [vmem:[%s9257_s1 + $0x624] ss:$8 sps:$4 sm:$0xff]   ;;  %v6166_v11 = vld [vmem:[%s9257_s1 + $0x620] ss:$8 sps:$4 sm:$0xff]  }
   0x5   :  { %3618 = vmatprep.subr.bf16.mxu0 %v6157_v5  ;;  %v6167_v12 = vld [vmem:[%s9257_s1 + $0x34] ss:$8 sps:$4 sm:$0xff]   ;;  %v6171_v14 = vld [vmem:[%s9257_s1 + $0x30] ss:$8 sps:$4 sm:$0xff]   ;;  %v6173_v16 = vld [vmem:[%s9257_s1 + $0x44] ss:$8 sps:$4 sm:$0xff]  }
   0x6   :  { %v6169_v13 = vld [vmem:[%s9257_s1 + $0x634] ss:$8 sps:$4 sm:$0xff]   ;;  %v6172_v15 = vld [vmem:[%s9257_s1 + $0x630] ss:$8 sps:$4 sm:$0xff]   ;;  %v6175_v17 = vld [vmem:[%s9257_s1 + $0x644] ss:$8 sps:$4 sm:$0xff]  }
   0x7   :  { %3301 = vmatpush1.bf16.msra.mxu1 %v6159_v6  ;;  %v6177_v18 = vld [vmem:[%s9257_s1 + $0x40] ss:$8 sps:$4 sm:$0xff]   ;;  %v6179_v20 = vld [vmem:[%s9257_s1 + $0x54] ss:$8 sps:$4 sm:$0xff]   ;;  %v6183_v22 = vld [vmem:[%s9257_s1 + $0x50] ss:$8 sps:$4 sm:$0xff]  }
   0x8   :  { %3619 = vmatpush1.bf16.msra.mxu0 %v6160_v7  ;;  %3302 = vmatprep.subr.bf16.mxu1 %v6161_v8  ;;  %v6178_v19 = vld [vmem:[%s9257_s1 + $0x640] ss:$8 sps:$4 sm:$0xff]   ;;  %v6181_v21 = vld [vmem:[%s9257_s1 + $0x654] ss:$8 sps:$4 sm:$0xff]   ;;  %v6184_v23 = vld [vmem:[%s9257_s1 + $0x650] ss:$8 sps:$4 sm:$0xff]  }
   0x9   :  { %3620 = vmatprep.subr.bf16.mxu0 %v6163_v9  ;;  %v6185_v24 = vld [vmem:[%s9257_s1 + $0x64] ss:$8 sps:$4 sm:$0xff]   ;;  %v6189_v26 = vld [vmem:[%s9257_s1 + $0x60] ss:$8 sps:$4 sm:$0xff]   ;;  %v6191_v28 = vld [vmem:[%s9257_s1 + $0x74] ss:$8 sps:$4 sm:$0xff]  }
   0xa   :  { %v6187_v25 = vld [vmem:[%s9257_s1 + $0x664] ss:$8 sps:$4 sm:$0xff]   ;;  %v6190_v27 = vld [vmem:[%s9257_s1 + $0x660] ss:$8 sps:$4 sm:$0xff]   ;;  %v6193_v29 = vld [vmem:[%s9257_s1 + $0x674] ss:$8 sps:$4 sm:$0xff]  }
   0xb   :  { %3303 = vmatpush1.bf16.msra.mxu1 %v6165_v10  ;;  %v6195_v30 = vld [vmem:[%s9257_s1 + $0x70] ss:$8 sps:$4 sm:$0xff]   ;;  %v6197_v32 = vld [vmem:[%s9257_s1 + $0x84] ss:$8 sps:$4 sm:$0xff]   ;;  %v6201_v34 = vld [vmem:[%s9257_s1 + $0x80] ss:$8 sps:$4 sm:$0xff]  }
   0xc   :  { %3621 = vmatpush1.bf16.msra.mxu0 %v6166_v11  ;;  %3304 = vmatprep.subr.bf16.mxu1 %v6167_v12  ;;  %v6196_v31 = vld [vmem:[%s9257_s1 + $0x670] ss:$8 sps:$4 sm:$0xff]   ;;  %v6199_v33 = vld [vmem:[%s9257_s1 + $0x684] ss:$8 sps:$4 sm:$0xff]   ;;  %v6202_v35 = vld [vmem:[%s9257_s1 + $0x680] ss:$8 sps:$4 sm:$0xff]  }
   0xd   :  { %3622 = vmatprep.subr.bf16.mxu0 %v6169_v13  ;;  %v6203_v36 = vld [vmem:[%s9257_s1 + $0x94] ss:$8 sps:$4 sm:$0xff]   ;;  %v6207_v38 = vld [vmem:[%s9257_s1 + $0x90] ss:$8 sps:$4 sm:$0xff]   ;;  %v6209_v40 = vld [vmem:[%s9257_s1 + $0xa4] ss:$8 sps:$4 sm:$0xff]  }
   0xe   :  { %v6205_v37 = vld [vmem:[%s9257_s1 + $0x694] ss:$8 sps:$4 sm:$0xff]   ;;  %v6208_v39 = vld [vmem:[%s9257_s1 + $0x690] ss:$8 sps:$4 sm:$0xff]   ;;  %v6211_v41 = vld [vmem:[%s9257_s1 + $0x6a4] ss:$8 sps:$4 sm:$0xff]  }
   0xf   :  { %3305 = vmatpush1.bf16.msra.mxu1 %v6171_v14  ;;  %v6213_v42 = vld [vmem:[%s9257_s1 + $0xa0] ss:$8 sps:$4 sm:$0xff]   ;;  %v6215_v44 = vld [vmem:[%s9257_s1 + $0xb4] ss:$8 sps:$4 sm:$0xff]   ;;  %v6219_v46 = vld [vmem:[%s9257_s1 + $0xb0] ss:$8 sps:$4 sm:$0xff]  }
  0x10   :  { %3623 = vmatpush1.bf16.msra.mxu0 %v6172_v15  ;;  %3306 = vmatprep.subr.bf16.mxu1 %v6173_v16  ;;  %v6214_v43 = vld [vmem:[%s9257_s1 + $0x6a0] ss:$8 sps:$4 sm:$0xff]   ;;  %v6217_v45 = vld [vmem:[%s9257_s1 + $0x6b4] ss:$8 sps:$4 sm:$0xff]   ;;  %v6220_v47 = vld [vmem:[%s9257_s1 + $0x6b0] ss:$8 sps:$4 sm:$0xff]  }
  0x11   :  { %3624 = vmatprep.subr.bf16.mxu0 %v6175_v17  ;;  %v6247_v48 = vld [vmem:[%s9256_s0 + $0x4] ss:$120 sps:$4 sm:$0xff]   ;;  %v6253_v51 = vld [vmem:[%s9256_s0 + $0x34] ss:$120 sps:$4 sm:$0xff]   ;;  %v6225_v52 = vld [vmem:[%s9257_s1 + $0xc0] ss:$8 sps:$4 sm:$0xff]  }
  0x12   :  { %v6221_v49 = vld [vmem:[%s9257_s1 + $0xc4] ss:$8 sps:$4 sm:$0xff]   ;;  %3330 = vmatprep.mubr.bf16.mxu1 %v6247_v48  ;;  %v6226_v53 = vld [vmem:[%s9257_s1 + $0x6c0] ss:$8 sps:$4 sm:$0xff]   ;;  %v6227_v54 = vld [vmem:[%s9257_s1 + $0xd4] ss:$8 sps:$4 sm:$0xff]   ;;  %3648 = vmatprep.mubr.bf16.mxu0 %v6253_v51 }
  0x13   :  { %3307 = vmatpush1.bf16.msra.mxu1 %v6177_v18  ;;  %v6223_v50 = vld [vmem:[%s9257_s1 + $0x6c4] ss:$8 sps:$4 sm:$0xff]   ;;  %v6229_v55 = vld [vmem:[%s9257_s1 + $0x6d4] ss:$8 sps:$4 sm:$0xff]   ;;  %v6231_v56 = vld [vmem:[%s9257_s1 + $0xd0] ss:$8 sps:$4 sm:$0xff]  }
  0x14   :  { %3625 = vmatpush1.bf16.msra.mxu0 %v6178_v19  ;;  %3308 = vmatprep.subr.bf16.mxu1 %v6179_v20  ;;  %v6232_v57 = vld [vmem:[%s9257_s1 + $0x6d0] ss:$8 sps:$4 sm:$0xff]   ;;  %v6233_v58 = vld [vmem:[%s9257_s1 + $0xe4] ss:$8 sps:$4 sm:$0xff]   ;;  %v6237_v60 = vld [vmem:[%s9257_s1 + $0xe0] ss:$8 sps:$4 sm:$0xff]  }
  0x15   :  { %3626 = vmatprep.subr.bf16.mxu0 %v6181_v21  ;;  %v6235_v59 = vld [vmem:[%s9257_s1 + $0x6e4] ss:$8 sps:$4 sm:$0xff]   ;;  %v6238_v61 = vld [vmem:[%s9257_s1 + $0x6e0] ss:$8 sps:$4 sm:$0xff]   ;;  %v6239_v62 = vld [vmem:[%s9257_s1 + $0xf4] ss:$8 sps:$4 sm:$0xff]  }
  0x16   :  { %v6241_v63 = vld [vmem:[%s9257_s1 + $0x6f4] ss:$8 sps:$4 sm:$0xff]   ;;  %v6243_v0 = vld [vmem:[%s9257_s1 + $0xf0] ss:$8 sps:$4 sm:$0xff]   ;;  %v6250_v2 = vld [vmem:[%s9257_s1 + $0x104] ss:$8 sps:$4 sm:$0xff]  }
  0x17   :  { %3309 = vmatpush1.bf16.msra.mxu1 %v6183_v22  ;;  %v6244_v1 = vld [vmem:[%s9257_s1 + $0x6f0] ss:$8 sps:$4 sm:$0xff]   ;;  %v6256_v3 = vld [vmem:[%s9257_s1 + $0x704] ss:$8 sps:$4 sm:$0xff]   ;;  %v6248_v5 = vld [vmem:[%s9257_s1 + $0x100] ss:$8 sps:$4 sm:$0xff]  }
  0x18   :  { %3627 = vmatpush1.bf16.msra.mxu0 %v6184_v23  ;;  %3310 = vmatprep.subr.bf16.mxu1 %v6185_v24  ;;  %v6245_v4 = vld [vmem:[%s9256_s0] ss:$120 sps:$4 sm:$0xff]   ;;  %v6251_v6 = vld [vmem:[%s9256_s0 + $0x30] ss:$120 sps:$4 sm:$0xff]   ;;  %v6259_v8 = vld [vmem:[%s9257_s1 + $0x114] ss:$8 sps:$4 sm:$0xff]  }
  0x19   :  { %3628 = vmatprep.subr.bf16.mxu0 %v6187_v25  ;;  %v6254_v7 = vld [vmem:[%s9257_s1 + $0x700] ss:$8 sps:$4 sm:$0xff]   ;;  %v6262_v9 = vld [vmem:[%s9257_s1 + $0x714] ss:$8 sps:$4 sm:$0xff]   ;;  %v6257_v10 = vld [vmem:[%s9257_s1 + $0x110] ss:$8 sps:$4 sm:$0xff]  }
  0x1a   :  { %v6260_v11 = vld [vmem:[%s9257_s1 + $0x710] ss:$8 sps:$4 sm:$0xff]   ;;  %v6265_v12 = vld [vmem:[%s9257_s1 + $0x124] ss:$8 sps:$4 sm:$0xff]   ;;  %v6263_v14 = vld [vmem:[%s9257_s1 + $0x120] ss:$8 sps:$4 sm:$0xff]  }
  0x1b   :  { %3311 = vmatpush1.bf16.msra.mxu1 %v6189_v26  ;;  %v6268_v13 = vld [vmem:[%s9257_s1 + $0x724] ss:$8 sps:$4 sm:$0xff]   ;;  %v6266_v15 = vld [vmem:[%s9257_s1 + $0x720] ss:$8 sps:$4 sm:$0xff]   ;;  %v6271_v16 = vld [vmem:[%s9257_s1 + $0x134] ss:$8 sps:$4 sm:$0xff]  }
  0x1c   :  { %3629 = vmatpush1.bf16.msra.mxu0 %v6190_v27  ;;  %3312 = vmatprep.subr.bf16.mxu1 %v6191_v28  ;;  %v6274_v17 = vld [vmem:[%s9257_s1 + $0x734] ss:$8 sps:$4 sm:$0xff]   ;;  %v6269_v18 = vld [vmem:[%s9257_s1 + $0x130] ss:$8 sps:$4 sm:$0xff]   ;;  %v6277_v20 = vld [vmem:[%s9257_s1 + $0x144] ss:$8 sps:$4 sm:$0xff]  }
  0x1d   :  { %3630 = vmatprep.subr.bf16.mxu0 %v6193_v29  ;;  %v6272_v19 = vld [vmem:[%s9257_s1 + $0x730] ss:$8 sps:$4 sm:$0xff]   ;;  %v6280_v21 = vld [vmem:[%s9257_s1 + $0x744] ss:$8 sps:$4 sm:$0xff]   ;;  %v6275_v22 = vld [vmem:[%s9257_s1 + $0x140] ss:$8 sps:$4 sm:$0xff]  }
  0x1e   :  { %v6278_v23 = vld [vmem:[%s9257_s1 + $0x740] ss:$8 sps:$4 sm:$0xff]   ;;  %v6283_v24 = vld [vmem:[%s9257_s1 + $0x154] ss:$8 sps:$4 sm:$0xff]   ;;  %v6281_v26 = vld [vmem:[%s9257_s1 + $0x150] ss:$8 sps:$4 sm:$0xff]  }
  0x1f   :  { %3313 = vmatpush1.bf16.msra.mxu1 %v6195_v30  ;;  %v6286_v25 = vld [vmem:[%s9257_s1 + $0x754] ss:$8 sps:$4 sm:$0xff]   ;;  %v6284_v27 = vld [vmem:[%s9257_s1 + $0x750] ss:$8 sps:$4 sm:$0xff]   ;;  %v6289_v29 = vld [vmem:[%s9257_s1 + $0x164] ss:$8 sps:$4 sm:$0xff]  }
  0x20   :  { %3631 = vmatpush1.bf16.msra.mxu0 %v6196_v31  ;;  %3314 = vmatprep.subr.bf16.mxu1 %v6197_v32  ;;  %v6335_v28 = vld [vmem:[%s9256_s0 + $0xf4] ss:$120 sps:$4 sm:$0xff]   ;;  %v6340_v31 = vld [vmem:[%s9256_s0 + $0x124] ss:$120 sps:$4 sm:$0xff]   ;;  %v6287_v32 = vld [vmem:[%s9257_s1 + $0x160] ss:$8 sps:$4 sm:$0xff]  }
  0x21   :  { %3632 = vmatprep.subr.bf16.mxu0 %v6199_v33  ;;  %v6292_v30 = vld [vmem:[%s9257_s1 + $0x764] ss:$8 sps:$4 sm:$0xff]   ;;  %v6290_v33 = vld [vmem:[%s9257_s1 + $0x760] ss:$8 sps:$4 sm:$0xff]   ;;  %v6305_v48 = vld [vmem:[%s9257_s1 + $0x190] ss:$8 sps:$4 sm:$0xff]  }
  0x22   :  { %v6316_v51 = vld [vmem:[%s9257_s1 + $0x7a4] ss:$8 sps:$4 sm:$0xff]  }
  0x23   :  { %3315 = vmatpush1.bf16.msra.mxu1 %v6201_v34  ;;  %v6345_v34 = vld [vmem:[%s9256_s0 + $0xf0] ss:$120 sps:$4 sm:$0xff]  }
  0x24   :  { %3633 = vmatpush1.bf16.msra.mxu0 %v6202_v35  ;;  %3316 = vmatprep.subr.bf16.mxu1 %v6203_v36  ;;  %v6346_v35 = vld [vmem:[%s9256_s0 + $0x120] ss:$120 sps:$4 sm:$0xff]   ;;  %v6295_v36 = vld [vmem:[%s9257_s1 + $0x174] ss:$8 sps:$4 sm:$0xff]  }
  0x25   :  { %3634 = vmatprep.subr.bf16.mxu0 %v6205_v37  ;;  %v6298_v37 = vld [vmem:[%s9257_s1 + $0x774] ss:$8 sps:$4 sm:$0xff]  }
  0x27   :  { %3317 = vmatpush1.bf16.msra.mxu1 %v6207_v38  ;;  %v6293_v38 = vld [vmem:[%s9257_s1 + $0x170] ss:$8 sps:$4 sm:$0xff]  }
  0x28   :  { %3635 = vmatpush1.bf16.msra.mxu0 %v6208_v39  ;;  %3318 = vmatprep.subr.bf16.mxu1 %v6209_v40  ;;  %v6296_v39 = vld [vmem:[%s9257_s1 + $0x770] ss:$8 sps:$4 sm:$0xff]   ;;  %v6355_v40 = vld [vmem:[%s9256_s0 + $0xc] ss:$120 sps:$4 sm:$0xff]  }
  0x29   :  { %3636 = vmatprep.subr.bf16.mxu0 %v6211_v41  ;;  %v6301_v41 = vld [vmem:[%s9257_s1 + $0x184] ss:$8 sps:$4 sm:$0xff]  }
  0x2b   :  { %3319 = vmatpush1.bf16.msra.mxu1 %v6213_v42  ;;  %v6304_v42 = vld [vmem:[%s9257_s1 + $0x784] ss:$8 sps:$4 sm:$0xff]  }
  0x2c   :  { %3637 = vmatpush1.bf16.msra.mxu0 %v6214_v43  ;;  %3320 = vmatprep.subr.bf16.mxu1 %v6215_v44  ;;  %v6361_v43 = vld [vmem:[%s9256_s0 + $0x3c] ss:$120 sps:$4 sm:$0xff]   ;;  %v6299_v44 = vld [vmem:[%s9257_s1 + $0x180] ss:$8 sps:$4 sm:$0xff]  }
  0x2d   :  { %3638 = vmatprep.subr.bf16.mxu0 %v6217_v45  ;;  %v6302_v45 = vld [vmem:[%s9257_s1 + $0x780] ss:$8 sps:$4 sm:$0xff]  }
  0x2f   :  { %3321 = vmatpush1.bf16.msra.mxu1 %v6219_v46  ;;  %v6307_v46 = vld [vmem:[%s9257_s1 + $0x194] ss:$8 sps:$4 sm:$0xff]  }
  0x30   :  { %3639 = vmatpush1.bf16.msra.mxu0 %v6220_v47  ;;  %3322 = vmatprep.subr.bf16.mxu1 %v6221_v49  ;;  %v6310_v47 = vld [vmem:[%s9257_s1 + $0x794] ss:$8 sps:$4 sm:$0xff]   ;;  %v6308_v49 = vld [vmem:[%s9257_s1 + $0x790] ss:$8 sps:$4 sm:$0xff]  }
  0x31   :  { %3640 = vmatprep.subr.bf16.mxu0 %v6223_v50  ;;  %v6313_v50 = vld [vmem:[%s9257_s1 + $0x1a4] ss:$8 sps:$4 sm:$0xff]  }
  0x33   :  { %3323 = vmatpush1.bf16.msra.mxu1 %v6225_v52  ;;  %v6311_v52 = vld [vmem:[%s9257_s1 + $0x1a0] ss:$8 sps:$4 sm:$0xff]  }
  0x34   :  { %3641 = vmatpush1.bf16.msra.mxu0 %v6226_v53  ;;  %3324 = vmatprep.subr.bf16.mxu1 %v6227_v54  ;;  %v6314_v53 = vld [vmem:[%s9257_s1 + $0x7a0] ss:$8 sps:$4 sm:$0xff]   ;;  %v6319_v54 = vld [vmem:[%s9257_s1 + $0x1b4] ss:$8 sps:$4 sm:$0xff]  }
  0x35   :  { %3642 = vmatprep.subr.bf16.mxu0 %v6229_v55  ;;  %v6322_v55 = vld [vmem:[%s9257_s1 + $0x7b4] ss:$8 sps:$4 sm:$0xff]  }
  0x37   :  { %3325 = vmatpush1.bf16.msra.mxu1 %v6231_v56  ;;  %v6317_v56 = vld [vmem:[%s9257_s1 + $0x1b0] ss:$8 sps:$4 sm:$0xff]  }
  0x38   :  { %3643 = vmatpush1.bf16.msra.mxu0 %v6232_v57  ;;  %3326 = vmatprep.subr.bf16.mxu1 %v6233_v58  ;;  %v6320_v57 = vld [vmem:[%s9257_s1 + $0x7b0] ss:$8 sps:$4 sm:$0xff]   ;;  %v6325_v58 = vld [vmem:[%s9257_s1 + $0x1c4] ss:$8 sps:$4 sm:$0xff]  }
  0x39   :  { %3644 = vmatprep.subr.bf16.mxu0 %v6235_v59  ;;  %v6328_v59 = vld [vmem:[%s9257_s1 + $0x7c4] ss:$8 sps:$4 sm:$0xff]  }
  0x3b   :  { %3327 = vmatpush1.bf16.msra.mxu1 %v6237_v60  ;;  %v6323_v60 = vld [vmem:[%s9257_s1 + $0x1c0] ss:$8 sps:$4 sm:$0xff]  }
  0x3c   :  { %3645 = vmatpush1.bf16.msra.mxu0 %v6238_v61  ;;  %3328 = vmatprep.subr.bf16.mxu1 %v6239_v62  ;;  %v6326_v61 = vld [vmem:[%s9257_s1 + $0x7c0] ss:$8 sps:$4 sm:$0xff]   ;;  %v6331_v62 = vld [vmem:[%s9257_s1 + $0x1d4] ss:$8 sps:$4 sm:$0xff]  }
  0x3d   :  { %3646 = vmatprep.subr.bf16.mxu0 %v6241_v63  ;;  %v6334_v63 = vld [vmem:[%s9257_s1 + $0x7d4] ss:$8 sps:$4 sm:$0xff]  }
  0x3f   :  { %3329 = vmatpush1.bf16.msra.mxu1 %v6243_v0  ;;  %v6329_v0 = vld [vmem:[%s9257_s1 + $0x1d0] ss:$8 sps:$4 sm:$0xff]  }
  0x40   :  { %3647 = vmatpush1.bf16.msra.mxu0 %v6244_v1  ;;  %3351 = vmatprep.subr.bf16.mxu1 %v6250_v2  ;;  %v6332_v1 = vld [vmem:[%s9257_s1 + $0x7d0] ss:$8 sps:$4 sm:$0xff]   ;;  %v6339_v2 = vld [vmem:[%s9257_s1 + $0x1e4] ss:$8 sps:$4 sm:$0xff]  }
  0x41   :  { %3669 = vmatprep.subr.bf16.mxu0 %v6256_v3  ;;  %v6344_v3 = vld [vmem:[%s9257_s1 + $0x7e4] ss:$8 sps:$4 sm:$0xff]  }
  0x42   :  { %3331 = vmatmul.mubr.bf16.vlgmr.msra.gmra.mrb[0].mxu1 %v6245_v4  ;;  %v6337_v4 = vld [vmem:[%s9257_s1 + $0x1e0] ss:$8 sps:$4 sm:$0xff]  }
  0x43   :  { %3649 = vmatmul.mubr.bf16.vlgmr.msra.gmra.mrb[0].mxu0 %v6251_v6  ;;  %3352 = vmatpush1.bf16.msra.mxu1 %v6248_v5  ;;  %v6342_v5 = vld [vmem:[%s9257_s1 + $0x7e0] ss:$8 sps:$4 sm:$0xff]   ;;  %v6349_v6 = vld [vmem:[%s9257_s1 + $0x1f4] ss:$8 sps:$4 sm:$0xff]  }
  0x44   :  { %3670 = vmatpush1.bf16.msra.mxu0 %v6254_v7  ;;  %3353 = vmatprep.subr.bf16.mxu1 %v6259_v8  ;;  %v6352_v7 = vld [vmem:[%s9257_s1 + $0x7f4] ss:$8 sps:$4 sm:$0xff]   ;;  %v6347_v8 = vld [vmem:[%s9257_s1 + $0x1f0] ss:$8 sps:$4 sm:$0xff]  }
  0x45   :  { %3671 = vmatprep.subr.bf16.mxu0 %v6262_v9  ;;  %3340 = vmatprep.mubr.bf16.mxu1 %v6335_v28  ;;  %v6350_v9 = vld [vmem:[%s9257_s1 + $0x7f0] ss:$8 sps:$4 sm:$0xff]   ;;  %v6379_v28 = vld [vmem:[%s9257_s1 + $0x234] ss:$8 sps:$4 sm:$0xff]  }
  0x46   :  { %3658 = vmatprep.mubr.bf16.mxu0 %v6340_v31  ;;  %v6380_v31 = vld [vmem:[%s9257_s1 + $0x830] ss:$8 sps:$4 sm:$0xff]  }
  0x47   :  { %3354 = vmatpush1.bf16.msra.mxu1 %v6257_v10  ;;  %v6358_v10 = vld [vmem:[%s9257_s1 + $0x204] ss:$8 sps:$4 sm:$0xff]  }
  0x48   :  { %3672 = vmatpush1.bf16.msra.mxu0 %v6260_v11  ;;  %3355 = vmatprep.subr.bf16.mxu1 %v6265_v12  ;;  %v6364_v11 = vld [vmem:[%s9257_s1 + $0x804] ss:$8 sps:$4 sm:$0xff]   ;;  %v6353_v12 = vld [vmem:[%s9256_s0 + $0x8] ss:$120 sps:$4 sm:$0xff]  }
  0x49   :  { %3673 = vmatprep.subr.bf16.mxu0 %v6268_v13  ;;  %v6356_v13 = vld [vmem:[%s9257_s1 + $0x200] ss:$8 sps:$4 sm:$0xff]  }
  0x4a   :  { %3341 = vmatmul.mubr.bf16.gmra.mrb[4].mxu1 %v6345_v34  ;;  %v6388_v34 = vld [vmem:[%s9257_s1 + $0x844] ss:$8 sps:$4 sm:$0xff]  }
  0x4b   :  { %3356 = vmatpush1.bf16.msra.mxu1 %v6263_v14  ;;  %3659 = vmatmul.mubr.bf16.gmra.mrb[4].mxu0 %v6346_v35  ;;  %v6359_v14 = vld [vmem:[%s9256_s0 + $0x38] ss:$120 sps:$4 sm:$0xff]   ;;  %v6469_v35 = vld [vmem:[%s9256_s0 + $0x44] ss:$120 sps:$4 sm:$0xff]  }
  0x4c   :  { %3674 = vmatpush1.bf16.msra.mxu0 %v6266_v15  ;;  %3357 = vmatprep.subr.bf16.mxu1 %v6271_v16  ;;  %v6362_v15 = vld [vmem:[%s9257_s1 + $0x800] ss:$8 sps:$4 sm:$0xff]   ;;  %v6367_v16 = vld [vmem:[%s9257_s1 + $0x214] ss:$8 sps:$4 sm:$0xff]  }
  0x4d   :  { %3675 = vmatprep.subr.bf16.mxu0 %v6274_v17  ;;  %3383 = vmatprep.mubr.bf16.mxu1 %v6355_v40  ;;  %v6370_v17 = vld [vmem:[%s9257_s1 + $0x814] ss:$8 sps:$4 sm:$0xff]   ;;  %v6389_v40 = vld [vmem:[%s9257_s1 + $0x250] ss:$8 sps:$4 sm:$0xff]  }
  0x4e   :  { %3701 = vmatprep.mubr.bf16.mxu0 %v6361_v43  ;;  %v6400_v43 = vld [vmem:[%s9257_s1 + $0x864] ss:$8 sps:$4 sm:$0xff]  }
  0x4f   :  { %3358 = vmatpush1.bf16.msra.mxu1 %v6269_v18  ;;  %v6365_v18 = vld [vmem:[%s9257_s1 + $0x210] ss:$8 sps:$4 sm:$0xff]  }
  0x50   :  { %3676 = vmatpush1.bf16.msra.mxu0 %v6272_v19  ;;  %3359 = vmatprep.subr.bf16.mxu1 %v6277_v20  ;;  %v6368_v19 = vld [vmem:[%s9257_s1 + $0x810] ss:$8 sps:$4 sm:$0xff]   ;;  %v6443_v20 = vld [vmem:[%s9256_s0 + $0xfc] ss:$120 sps:$4 sm:$0xff]  }
  0x51   :  { %3677 = vmatprep.subr.bf16.mxu0 %v6280_v21  ;;  %v6373_v21 = vld [vmem:[%s9257_s1 + $0x224] ss:$8 sps:$4 sm:$0xff]  }
  0x53   :  { %3360 = vmatpush1.bf16.msra.mxu1 %v6275_v22  ;;  %v6376_v22 = vld [vmem:[%s9257_s1 + $0x824] ss:$8 sps:$4 sm:$0xff]  }
  0x54   :  { %3678 = vmatpush1.bf16.msra.mxu0 %v6278_v23  ;;  %3361 = vmatprep.subr.bf16.mxu1 %v6283_v24  ;;  %v6448_v23 = vld [vmem:[%s9256_s0 + $0x12c] ss:$120 sps:$4 sm:$0xff]   ;;  %v6371_v24 = vld [vmem:[%s9257_s1 + $0x220] ss:$8 sps:$4 sm:$0xff]  }
  0x55   :  { %3679 = vmatprep.subr.bf16.mxu0 %v6286_v25  ;;  %v6374_v25 = vld [vmem:[%s9257_s1 + $0x820] ss:$8 sps:$4 sm:$0xff]  }
  0x57   :  { %3362 = vmatpush1.bf16.msra.mxu1 %v6281_v26  ;;  %v6453_v26 = vld [vmem:[%s9256_s0 + $0xf8] ss:$120 sps:$4 sm:$0xff]  }
  0x58   :  { %3680 = vmatpush1.bf16.msra.mxu0 %v6284_v27  ;;  %3363 = vmatprep.subr.bf16.mxu1 %v6289_v29  ;;  %v6454_v27 = vld [vmem:[%s9256_s0 + $0x128] ss:$120 sps:$4 sm:$0xff]   ;;  %v6382_v29 = vld [vmem:[%s9257_s1 + $0x834] ss:$8 sps:$4 sm:$0xff]  }
  0x59   :  { %3681 = vmatprep.subr.bf16.mxu0 %v6292_v30  ;;  %v6377_v30 = vld [vmem:[%s9257_s1 + $0x230] ss:$8 sps:$4 sm:$0xff]  }
  0x5b   :  { %3364 = vmatpush1.bf16.msra.mxu1 %v6287_v32  ;;  %v6463_v32 = vld [vmem:[%s9256_s0 + $0x14] ss:$120 sps:$4 sm:$0xff]  }
  0x5c   :  { %3682 = vmatpush1.bf16.msra.mxu0 %v6290_v33  ;;  %3365 = vmatprep.subr.bf16.mxu1 %v6295_v36  ;;  %v6385_v33 = vld [vmem:[%s9257_s1 + $0x244] ss:$8 sps:$4 sm:$0xff]   ;;  %v6383_v36 = vld [vmem:[%s9257_s1 + $0x240] ss:$8 sps:$4 sm:$0xff]  }
  0x5d   :  { %3683 = vmatprep.subr.bf16.mxu0 %v6298_v37  ;;  %v6386_v37 = vld [vmem:[%s9257_s1 + $0x840] ss:$8 sps:$4 sm:$0xff]  }
  0x5f   :  { %3366 = vmatpush1.bf16.msra.mxu1 %v6293_v38  ;;  %v6391_v38 = vld [vmem:[%s9257_s1 + $0x254] ss:$8 sps:$4 sm:$0xff]  }
  0x60   :  { %3684 = vmatpush1.bf16.msra.mxu0 %v6296_v39  ;;  %3367 = vmatprep.subr.bf16.mxu1 %v6301_v41  ;;  %v6394_v39 = vld [vmem:[%s9257_s1 + $0x854] ss:$8 sps:$4 sm:$0xff]   ;;  %v6392_v41 = vld [vmem:[%s9257_s1 + $0x850] ss:$8 sps:$4 sm:$0xff]  }
  0x61   :  { %3685 = vmatprep.subr.bf16.mxu0 %v6304_v42  ;;  %v6397_v42 = vld [vmem:[%s9257_s1 + $0x264] ss:$8 sps:$4 sm:$0xff]  }
  0x63   :  { %3368 = vmatpush1.bf16.msra.mxu1 %v6299_v44  ;;  %v6395_v44 = vld [vmem:[%s9257_s1 + $0x260] ss:$8 sps:$4 sm:$0xff]  }
  0x64   :  { %3686 = vmatpush1.bf16.msra.mxu0 %v6302_v45  ;;  %3369 = vmatprep.subr.bf16.mxu1 %v6307_v46  ;;  %v6398_v45 = vld [vmem:[%s9257_s1 + $0x860] ss:$8 sps:$4 sm:$0xff]   ;;  %v6403_v46 = vld [vmem:[%s9257_s1 + $0x274] ss:$8 sps:$4 sm:$0xff]  }
  0x65   :  { %3687 = vmatprep.subr.bf16.mxu0 %v6310_v47  ;;  %v6406_v47 = vld [vmem:[%s9257_s1 + $0x874] ss:$8 sps:$4 sm:$0xff]  }
  0x67   :  { %3370 = vmatpush1.bf16.msra.mxu1 %v6305_v48  ;;  %v6401_v48 = vld [vmem:[%s9257_s1 + $0x270] ss:$8 sps:$4 sm:$0xff]  }
  0x68   :  { %3688 = vmatpush1.bf16.msra.mxu0 %v6308_v49  ;;  %3371 = vmatprep.subr.bf16.mxu1 %v6313_v50  ;;  %v6404_v49 = vld [vmem:[%s9257_s1 + $0x870] ss:$8 sps:$4 sm:$0xff]   ;;  %v6409_v50 = vld [vmem:[%s9257_s1 + $0x284] ss:$8 sps:$4 sm:$0xff]  }
  0x69   :  { %3689 = vmatprep.subr.bf16.mxu0 %v6316_v51  ;;  %v6412_v51 = vld [vmem:[%s9257_s1 + $0x884] ss:$8 sps:$4 sm:$0xff]  }
  0x6b   :  { %3372 = vmatpush1.bf16.msra.mxu1 %v6311_v52  ;;  %v6407_v52 = vld [vmem:[%s9257_s1 + $0x280] ss:$8 sps:$4 sm:$0xff]  }
  0x6c   :  { %3690 = vmatpush1.bf16.msra.mxu0 %v6314_v53  ;;  %3373 = vmatprep.subr.bf16.mxu1 %v6319_v54  ;;  %v6410_v53 = vld [vmem:[%s9257_s1 + $0x880] ss:$8 sps:$4 sm:$0xff]   ;;  %v6415_v54 = vld [vmem:[%s9257_s1 + $0x294] ss:$8 sps:$4 sm:$0xff]  }
  0x6d   :  { %3691 = vmatprep.subr.bf16.mxu0 %v6322_v55  ;;  %v6418_v55 = vld [vmem:[%s9257_s1 + $0x894] ss:$8 sps:$4 sm:$0xff]  }
  0x6f   :  { %3374 = vmatpush1.bf16.msra.mxu1 %v6317_v56  ;;  %v6413_v56 = vld [vmem:[%s9257_s1 + $0x290] ss:$8 sps:$4 sm:$0xff]  }
  0x70   :  { %3692 = vmatpush1.bf16.msra.mxu0 %v6320_v57  ;;  %3375 = vmatprep.subr.bf16.mxu1 %v6325_v58  ;;  %v6416_v57 = vld [vmem:[%s9257_s1 + $0x890] ss:$8 sps:$4 sm:$0xff]   ;;  %v6421_v58 = vld [vmem:[%s9257_s1 + $0x2a4] ss:$8 sps:$4 sm:$0xff]  }
  0x71   :  { %3693 = vmatprep.subr.bf16.mxu0 %v6328_v59  ;;  %v6424_v59 = vld [vmem:[%s9257_s1 + $0x8a4] ss:$8 sps:$4 sm:$0xff]  }
  0x73   :  { %3376 = vmatpush1.bf16.msra.mxu1 %v6323_v60  ;;  %v6419_v60 = vld [vmem:[%s9257_s1 + $0x2a0] ss:$8 sps:$4 sm:$0xff]  }
  0x74   :  { %3694 = vmatpush1.bf16.msra.mxu0 %v6326_v61  ;;  %3377 = vmatprep.subr.bf16.mxu1 %v6331_v62  ;;  %v6422_v61 = vld [vmem:[%s9257_s1 + $0x8a0] ss:$8 sps:$4 sm:$0xff]   ;;  %v6427_v62 = vld [vmem:[%s9257_s1 + $0x2b4] ss:$8 sps:$4 sm:$0xff]  }
  0x75   :  { %3695 = vmatprep.subr.bf16.mxu0 %v6334_v63  ;;  %v6430_v63 = vld [vmem:[%s9257_s1 + $0x8b4] ss:$8 sps:$4 sm:$0xff]  }
  0x77   :  { %3378 = vmatpush1.bf16.msra.mxu1 %v6329_v0  ;;  %v6425_v0 = vld [vmem:[%s9257_s1 + $0x2b0] ss:$8 sps:$4 sm:$0xff]  }
  0x78   :  { %3696 = vmatpush1.bf16.msra.mxu0 %v6332_v1  ;;  %3379 = vmatprep.subr.bf16.mxu1 %v6339_v2  ;;  %v6428_v1 = vld [vmem:[%s9257_s1 + $0x8b0] ss:$8 sps:$4 sm:$0xff]   ;;  %v6433_v2 = vld [vmem:[%s9257_s1 + $0x2c4] ss:$8 sps:$4 sm:$0xff]  }
  0x79   :  { %3697 = vmatprep.subr.bf16.mxu0 %v6344_v3  ;;  %v6436_v3 = vld [vmem:[%s9257_s1 + $0x8c4] ss:$8 sps:$4 sm:$0xff]  }
  0x7b   :  { %3380 = vmatpush1.bf16.msra.mxu1 %v6337_v4  ;;  %v6431_v4 = vld [vmem:[%s9257_s1 + $0x2c0] ss:$8 sps:$4 sm:$0xff]  }
  0x7c   :  { %3698 = vmatpush1.bf16.msra.mxu0 %v6342_v5  ;;  %3381 = vmatprep.subr.bf16.mxu1 %v6349_v6  ;;  %v6434_v5 = vld [vmem:[%s9257_s1 + $0x8c0] ss:$8 sps:$4 sm:$0xff]   ;;  %v6439_v6 = vld [vmem:[%s9257_s1 + $0x2d4] ss:$8 sps:$4 sm:$0xff]  }
  0x7d   :  { %3699 = vmatprep.subr.bf16.mxu0 %v6352_v7  ;;  %v6442_v7 = vld [vmem:[%s9257_s1 + $0x8d4] ss:$8 sps:$4 sm:$0xff]  }
  0x7f   :  { %3382 = vmatpush1.bf16.msra.mxu1 %v6347_v8  ;;  %v6437_v8 = vld [vmem:[%s9257_s1 + $0x2d0] ss:$8 sps:$4 sm:$0xff]  }
  0x80   :  { %3700 = vmatpush1.bf16.msra.mxu0 %v6350_v9  ;;  %3404 = vmatprep.subr.bf16.mxu1 %v6358_v10  ;;  %v6440_v9 = vld [vmem:[%s9257_s1 + $0x8d0] ss:$8 sps:$4 sm:$0xff]   ;;  %v6447_v10 = vld [vmem:[%s9257_s1 + $0x2e4] ss:$8 sps:$4 sm:$0xff]  }
  0x81   :  { %3722 = vmatprep.subr.bf16.mxu0 %v6364_v11  ;;  %v6452_v11 = vld [vmem:[%s9257_s1 + $0x8e4] ss:$8 sps:$4 sm:$0xff]  }
  0x82   :  { %3384 = vmatmul.mubr.bf16.vlgmr.msra.gmra.mrb[0].mxu1 %v6353_v12  ;;  %v6445_v12 = vld [vmem:[%s9257_s1 + $0x2e0] ss:$8 sps:$4 sm:$0xff]  }
  0x83   :  { %3702 = vmatmul.mubr.bf16.vlgmr.msra.gmra.mrb[0].mxu0 %v6359_v14  ;;  %3405 = vmatpush1.bf16.msra.mxu1 %v6356_v13  ;;  %v6450_v13 = vld [vmem:[%s9257_s1 + $0x8e0] ss:$8 sps:$4 sm:$0xff]   ;;  %v6457_v14 = vld [vmem:[%s9257_s1 + $0x2f4] ss:$8 sps:$4 sm:$0xff]  }
  0x84   :  { %3723 = vmatpush1.bf16.msra.mxu0 %v6362_v15  ;;  %3406 = vmatprep.subr.bf16.mxu1 %v6367_v16  ;;  %v6460_v15 = vld [vmem:[%s9257_s1 + $0x8f4] ss:$8 sps:$4 sm:$0xff]   ;;  %v6455_v16 = vld [vmem:[%s9257_s1 + $0x2f0] ss:$8 sps:$4 sm:$0xff]  }
  0x85   :  { %3724 = vmatprep.subr.bf16.mxu0 %v6370_v17  ;;  %3393 = vmatprep.mubr.bf16.mxu1 %v6443_v20  ;;  %v6458_v17 = vld [vmem:[%s9257_s1 + $0x8f0] ss:$8 sps:$4 sm:$0xff]  }
  0x86   :  { %3711 = vmatprep.mubr.bf16.mxu0 %v6448_v23  ;;  %v6461_v20 = vld [vmem:[%s9256_s0 + $0x10] ss:$120 sps:$4 sm:$0xff]  }
  0x87   :  { %3407 = vmatpush1.bf16.msra.mxu1 %v6365_v18  ;;  %v6466_v18 = vld [vmem:[%s9257_s1 + $0x304] ss:$8 sps:$4 sm:$0xff]   ;;  %v6470_v23 = vld [vmem:[%s9257_s1 + $0x900] ss:$8 sps:$4 sm:$0xff]  }
  0x88   :  { %3725 = vmatpush1.bf16.msra.mxu0 %v6368_v19  ;;  %3408 = vmatprep.subr.bf16.mxu1 %v6373_v21  ;;  %v6472_v19 = vld [vmem:[%s9257_s1 + $0x904] ss:$8 sps:$4 sm:$0xff]   ;;  %v6464_v21 = vld [vmem:[%s9257_s1 + $0x300] ss:$8 sps:$4 sm:$0xff]  }
  0x89   :  { %3726 = vmatprep.subr.bf16.mxu0 %v6376_v22  ;;  %v6467_v22 = vld [vmem:[%s9256_s0 + $0x40] ss:$120 sps:$4 sm:$0xff]  }
  0x8a   :  { %3394 = vmatmul.mubr.bf16.gmra.mrb[4].mxu1 %v6453_v26  ;;  %v6551_v26 = vld [vmem:[%s9256_s0 + $0x104] ss:$120 sps:$4 sm:$0xff]  }
  0x8b   :  { %3712 = vmatmul.mubr.bf16.gmra.mrb[4].mxu0 %v6454_v27  ;;  %3409 = vmatpush1.bf16.msra.mxu1 %v6371_v24  ;;  %v6475_v24 = vld [vmem:[%s9257_s1 + $0x314] ss:$8 sps:$4 sm:$0xff]  }
  0x8c   :  { %3727 = vmatpush1.bf16.msra.mxu0 %v6374_v25  ;;  %3410 = vmatprep.subr.bf16.mxu1 %v6379_v28  ;;  %v6478_v25 = vld [vmem:[%s9257_s1 + $0x914] ss:$8 sps:$4 sm:$0xff]   ;;  %v6473_v28 = vld [vmem:[%s9257_s1 + $0x310] ss:$8 sps:$4 sm:$0xff]  }
  0x8d   :  { %3728 = vmatprep.subr.bf16.mxu0 %v6382_v29  ;;  %3436 = vmatprep.mubr.bf16.mxu1 %v6463_v32  ;;  %v6556_v27 = vld [vmem:[%s9256_s0 + $0x134] ss:$120 sps:$4 sm:$0xff]   ;;  %v6476_v29 = vld [vmem:[%s9257_s1 + $0x910] ss:$8 sps:$4 sm:$0xff]   ;;  %v6479_v32 = vld [vmem:[%s9257_s1 + $0x320] ss:$8 sps:$4 sm:$0xff]  }
  0x8e   :  { %3754 = vmatprep.mubr.bf16.mxu0 %v6469_v35  ;;  %v6562_v35 = vld [vmem:[%s9256_s0 + $0x130] ss:$120 sps:$4 sm:$0xff]  }
  0x8f   :  { %3411 = vmatpush1.bf16.msra.mxu1 %v6377_v30  ;;  %v6481_v30 = vld [vmem:[%s9257_s1 + $0x324] ss:$8 sps:$4 sm:$0xff]  }
  0x90   :  { %3729 = vmatpush1.bf16.msra.mxu0 %v6380_v31  ;;  %3412 = vmatprep.subr.bf16.mxu1 %v6385_v33  ;;  %v6484_v31 = vld [vmem:[%s9257_s1 + $0x924] ss:$8 sps:$4 sm:$0xff]   ;;  %v6482_v33 = vld [vmem:[%s9257_s1 + $0x920] ss:$8 sps:$4 sm:$0xff]  }
  0x91   :  { %3730 = vmatprep.subr.bf16.mxu0 %v6388_v34  ;;  %v6561_v34 = vld [vmem:[%s9256_s0 + $0x100] ss:$120 sps:$4 sm:$0xff]  }
  0x93   :  { %3413 = vmatpush1.bf16.msra.mxu1 %v6383_v36  ;;  %v6487_v36 = vld [vmem:[%s9257_s1 + $0x334] ss:$8 sps:$4 sm:$0xff]  }
  0x94   :  { %3731 = vmatpush1.bf16.msra.mxu0 %v6386_v37  ;;  %3414 = vmatprep.subr.bf16.mxu1 %v6391_v38  ;;  %v6490_v37 = vld [vmem:[%s9257_s1 + $0x934] ss:$8 sps:$4 sm:$0xff]  }
  0x95   :  { %3732 = vmatprep.subr.bf16.mxu0 %v6394_v39  ;;  %v6571_v38 = vld [vmem:[%s9256_s0 + $0x1c] ss:$120 sps:$4 sm:$0xff]   ;;  %v6577_v39 = vld [vmem:[%s9256_s0 + $0x4c] ss:$120 sps:$4 sm:$0xff]  }
  0x97   :  { %3415 = vmatpush1.bf16.msra.mxu1 %v6389_v40  ;;  %v6485_v40 = vld [vmem:[%s9257_s1 + $0x330] ss:$8 sps:$4 sm:$0xff]  }
  0x98   :  { %3733 = vmatpush1.bf16.msra.mxu0 %v6392_v41  ;;  %3416 = vmatprep.subr.bf16.mxu1 %v6397_v42  ;;  %v6488_v41 = vld [vmem:[%s9257_s1 + $0x930] ss:$8 sps:$4 sm:$0xff]   ;;  %v6493_v42 = vld [vmem:[%s9257_s1 + $0x344] ss:$8 sps:$4 sm:$0xff]  }
  0x99   :  { %3734 = vmatprep.subr.bf16.mxu0 %v6400_v43  ;;  %v6496_v43 = vld [vmem:[%s9257_s1 + $0x944] ss:$8 sps:$4 sm:$0xff]  }
  0x9b   :  { %3417 = vmatpush1.bf16.msra.mxu1 %v6395_v44  ;;  %v6491_v44 = vld [vmem:[%s9257_s1 + $0x340] ss:$8 sps:$4 sm:$0xff]  }
  0x9c   :  { %3735 = vmatpush1.bf16.msra.mxu0 %v6398_v45  ;;  %3418 = vmatprep.subr.bf16.mxu1 %v6403_v46  ;;  %v6494_v45 = vld [vmem:[%s9257_s1 + $0x940] ss:$8 sps:$4 sm:$0xff]   ;;  %v6499_v46 = vld [vmem:[%s9257_s1 + $0x354] ss:$8 sps:$4 sm:$0xff]  }
  0x9d   :  { %3736 = vmatprep.subr.bf16.mxu0 %v6406_v47  ;;  %v6502_v47 = vld [vmem:[%s9257_s1 + $0x954] ss:$8 sps:$4 sm:$0xff]  }
  0x9f   :  { %3419 = vmatpush1.bf16.msra.mxu1 %v6401_v48  ;;  %v6497_v48 = vld [vmem:[%s9257_s1 + $0x350] ss:$8 sps:$4 sm:$0xff]  }
  0xa0   :  { %3737 = vmatpush1.bf16.msra.mxu0 %v6404_v49  ;;  %3420 = vmatprep.subr.bf16.mxu1 %v6409_v50  ;;  %v6500_v49 = vld [vmem:[%s9257_s1 + $0x950] ss:$8 sps:$4 sm:$0xff]   ;;  %v6505_v50 = vld [vmem:[%s9257_s1 + $0x364] ss:$8 sps:$4 sm:$0xff]  }
  0xa1   :  { %3738 = vmatprep.subr.bf16.mxu0 %v6412_v51  ;;  %v6508_v51 = vld [vmem:[%s9257_s1 + $0x964] ss:$8 sps:$4 sm:$0xff]  }
  0xa3   :  { %3421 = vmatpush1.bf16.msra.mxu1 %v6407_v52  ;;  %v6503_v52 = vld [vmem:[%s9257_s1 + $0x360] ss:$8 sps:$4 sm:$0xff]  }
  0xa4   :  { %3739 = vmatpush1.bf16.msra.mxu0 %v6410_v53  ;;  %3422 = vmatprep.subr.bf16.mxu1 %v6415_v54  ;;  %v6506_v53 = vld [vmem:[%s9257_s1 + $0x960] ss:$8 sps:$4 sm:$0xff]   ;;  %v6511_v54 = vld [vmem:[%s9257_s1 + $0x374] ss:$8 sps:$4 sm:$0xff]  }
  0xa5   :  { %3740 = vmatprep.subr.bf16.mxu0 %v6418_v55  ;;  %v6514_v55 = vld [vmem:[%s9257_s1 + $0x974] ss:$8 sps:$4 sm:$0xff]  }
  0xa7   :  { %3423 = vmatpush1.bf16.msra.mxu1 %v6413_v56  ;;  %v6509_v56 = vld [vmem:[%s9257_s1 + $0x370] ss:$8 sps:$4 sm:$0xff]  }
  0xa8   :  { %3741 = vmatpush1.bf16.msra.mxu0 %v6416_v57  ;;  %3424 = vmatprep.subr.bf16.mxu1 %v6421_v58  ;;  %v6512_v57 = vld [vmem:[%s9257_s1 + $0x970] ss:$8 sps:$4 sm:$0xff]   ;;  %v6517_v58 = vld [vmem:[%s9257_s1 + $0x384] ss:$8 sps:$4 sm:$0xff]  }
  0xa9   :  { %3742 = vmatprep.subr.bf16.mxu0 %v6424_v59  ;;  %v6520_v59 = vld [vmem:[%s9257_s1 + $0x984] ss:$8 sps:$4 sm:$0xff]  }
  0xab   :  { %3425 = vmatpush1.bf16.msra.mxu1 %v6419_v60  ;;  %v6515_v60 = vld [vmem:[%s9257_s1 + $0x380] ss:$8 sps:$4 sm:$0xff]  }
  0xac   :  { %3743 = vmatpush1.bf16.msra.mxu0 %v6422_v61  ;;  %3426 = vmatprep.subr.bf16.mxu1 %v6427_v62  ;;  %v6518_v61 = vld [vmem:[%s9257_s1 + $0x980] ss:$8 sps:$4 sm:$0xff]   ;;  %v6523_v62 = vld [vmem:[%s9257_s1 + $0x394] ss:$8 sps:$4 sm:$0xff]  }
  0xad   :  { %3744 = vmatprep.subr.bf16.mxu0 %v6430_v63  ;;  %v6526_v63 = vld [vmem:[%s9257_s1 + $0x994] ss:$8 sps:$4 sm:$0xff]  }
  0xaf   :  { %3427 = vmatpush1.bf16.msra.mxu1 %v6425_v0  ;;  %v6521_v0 = vld [vmem:[%s9257_s1 + $0x390] ss:$8 sps:$4 sm:$0xff]  }
  0xb0   :  { %3745 = vmatpush1.bf16.msra.mxu0 %v6428_v1  ;;  %3428 = vmatprep.subr.bf16.mxu1 %v6433_v2  ;;  %v6524_v1 = vld [vmem:[%s9257_s1 + $0x990] ss:$8 sps:$4 sm:$0xff]   ;;  %v6529_v2 = vld [vmem:[%s9257_s1 + $0x3a4] ss:$8 sps:$4 sm:$0xff]  }
  0xb1   :  { %3746 = vmatprep.subr.bf16.mxu0 %v6436_v3  ;;  %v6532_v3 = vld [vmem:[%s9257_s1 + $0x9a4] ss:$8 sps:$4 sm:$0xff]  }
  0xb3   :  { %3429 = vmatpush1.bf16.msra.mxu1 %v6431_v4  ;;  %v6527_v4 = vld [vmem:[%s9257_s1 + $0x3a0] ss:$8 sps:$4 sm:$0xff]  }
  0xb4   :  { %3747 = vmatpush1.bf16.msra.mxu0 %v6434_v5  ;;  %3430 = vmatprep.subr.bf16.mxu1 %v6439_v6  ;;  %v6530_v5 = vld [vmem:[%s9257_s1 + $0x9a0] ss:$8 sps:$4 sm:$0xff]   ;;  %v6535_v6 = vld [vmem:[%s9257_s1 + $0x3b4] ss:$8 sps:$4 sm:$0xff]  }
  0xb5   :  { %3748 = vmatprep.subr.bf16.mxu0 %v6442_v7  ;;  %v6538_v7 = vld [vmem:[%s9257_s1 + $0x9b4] ss:$8 sps:$4 sm:$0xff]  }
  0xb7   :  { %3431 = vmatpush1.bf16.msra.mxu1 %v6437_v8  ;;  %v6533_v8 = vld [vmem:[%s9257_s1 + $0x3b0] ss:$8 sps:$4 sm:$0xff]  }
  0xb8   :  { %3749 = vmatpush1.bf16.msra.mxu0 %v6440_v9  ;;  %3432 = vmatprep.subr.bf16.mxu1 %v6447_v10  ;;  %v6536_v9 = vld [vmem:[%s9257_s1 + $0x9b0] ss:$8 sps:$4 sm:$0xff]   ;;  %v6541_v10 = vld [vmem:[%s9257_s1 + $0x3c4] ss:$8 sps:$4 sm:$0xff]  }
  0xb9   :  { %3750 = vmatprep.subr.bf16.mxu0 %v6452_v11  ;;  %v6544_v11 = vld [vmem:[%s9257_s1 + $0x9c4] ss:$8 sps:$4 sm:$0xff]  }
  0xbb   :  { %3433 = vmatpush1.bf16.msra.mxu1 %v6445_v12  ;;  %v6539_v12 = vld [vmem:[%s9257_s1 + $0x3c0] ss:$8 sps:$4 sm:$0xff]  }
  0xbc   :  { %3751 = vmatpush1.bf16.msra.mxu0 %v6450_v13  ;;  %3434 = vmatprep.subr.bf16.mxu1 %v6457_v14  ;;  %v6542_v13 = vld [vmem:[%s9257_s1 + $0x9c0] ss:$8 sps:$4 sm:$0xff]   ;;  %v6547_v14 = vld [vmem:[%s9257_s1 + $0x3d4] ss:$8 sps:$4 sm:$0xff]  }
  0xbd   :  { %3752 = vmatprep.subr.bf16.mxu0 %v6460_v15  ;;  %v6550_v15 = vld [vmem:[%s9257_s1 + $0x9d4] ss:$8 sps:$4 sm:$0xff]  }
  0xbf   :  { %3435 = vmatpush1.bf16.msra.mxu1 %v6455_v16  ;;  %v6545_v16 = vld [vmem:[%s9257_s1 + $0x3d0] ss:$8 sps:$4 sm:$0xff]  }
  0xc0   :  { %3753 = vmatpush1.bf16.msra.mxu0 %v6458_v17  ;;  %3457 = vmatprep.subr.bf16.mxu1 %v6466_v18  ;;  %v6548_v17 = vld [vmem:[%s9257_s1 + $0x9d0] ss:$8 sps:$4 sm:$0xff]   ;;  %v6555_v18 = vld [vmem:[%s9257_s1 + $0x3e4] ss:$8 sps:$4 sm:$0xff]  }
  0xc1   :  { %3775 = vmatprep.subr.bf16.mxu0 %v6472_v19  ;;  %v6560_v19 = vld [vmem:[%s9257_s1 + $0x9e4] ss:$8 sps:$4 sm:$0xff]  }
  0xc2   :  { %3437 = vmatmul.mubr.bf16.vlgmr.msra.gmra.mrb[0].mxu1 %v6461_v20  ;;  %v6553_v20 = vld [vmem:[%s9257_s1 + $0x3e0] ss:$8 sps:$4 sm:$0xff]  }
  0xc3   :  { %3755 = vmatmul.mubr.bf16.vlgmr.msra.gmra.mrb[0].mxu0 %v6467_v22  ;;  %3458 = vmatpush1.bf16.msra.mxu1 %v6464_v21  ;;  %v6558_v21 = vld [vmem:[%s9257_s1 + $0x9e0] ss:$8 sps:$4 sm:$0xff]   ;;  %v6565_v22 = vld [vmem:[%s9257_s1 + $0x3f4] ss:$8 sps:$4 sm:$0xff]  }
  0xc4   :  { %3776 = vmatpush1.bf16.msra.mxu0 %v6470_v23  ;;  %3459 = vmatprep.subr.bf16.mxu1 %v6475_v24  ;;  %v6568_v23 = vld [vmem:[%s9257_s1 + $0x9f4] ss:$8 sps:$4 sm:$0xff]   ;;  %v6563_v24 = vld [vmem:[%s9257_s1 + $0x3f0] ss:$8 sps:$4 sm:$0xff]  }
  0xc5   :  { %3777 = vmatprep.subr.bf16.mxu0 %v6478_v25  ;;  %3446 = vmatprep.mubr.bf16.mxu1 %v6551_v26  ;;  %v6566_v25 = vld [vmem:[%s9257_s1 + $0x9f0] ss:$8 sps:$4 sm:$0xff]   ;;  %v6574_v26 = vld [vmem:[%s9257_s1 + $0x404] ss:$8 sps:$4 sm:$0xff]  }
  0xc6   :  { %3764 = vmatprep.mubr.bf16.mxu0 %v6556_v27  ;;  %v6580_v27 = vld [vmem:[%s9257_s1 + $0xa04] ss:$8 sps:$4 sm:$0xff]  }
  0xc7   :  { %3460 = vmatpush1.bf16.msra.mxu1 %v6473_v28  ;;  %v6569_v28 = vld [vmem:[%s9256_s0 + $0x18] ss:$120 sps:$4 sm:$0xff]  }
  0xc8   :  { %3778 = vmatpush1.bf16.msra.mxu0 %v6476_v29  ;;  %3461 = vmatprep.subr.bf16.mxu1 %v6481_v30  ;;  %v6572_v29 = vld [vmem:[%s9257_s1 + $0x400] ss:$8 sps:$4 sm:$0xff]  }
  0xc9   :  { %3779 = vmatprep.subr.bf16.mxu0 %v6484_v31  ;;  %v6575_v30 = vld [vmem:[%s9256_s0 + $0x48] ss:$120 sps:$4 sm:$0xff]  }
  0xca   :  { %3447 = vmatmul.mubr.bf16.gmra.mrb[4].mxu1 %v6561_v34  ;;  %v6578_v31 = vld [vmem:[%s9257_s1 + $0xa00] ss:$8 sps:$4 sm:$0xff]   ;;  %v6659_v34 = vld [vmem:[%s9256_s0 + $0x10c] ss:$120 sps:$4 sm:$0xff]  }
  0xcb   :  { %3765 = vmatmul.mubr.bf16.gmra.mrb[4].mxu0 %v6562_v35  ;;  %3462 = vmatpush1.bf16.msra.mxu1 %v6479_v32  ;;  %v6583_v32 = vld [vmem:[%s9257_s1 + $0x414] ss:$8 sps:$4 sm:$0xff]  }
  0xcc   :  { %3780 = vmatpush1.bf16.msra.mxu0 %v6482_v33  ;;  %3463 = vmatprep.subr.bf16.mxu1 %v6487_v36  ;;  %v6586_v33 = vld [vmem:[%s9257_s1 + $0xa14] ss:$8 sps:$4 sm:$0xff]   ;;  %v6581_v36 = vld [vmem:[%s9257_s1 + $0x410] ss:$8 sps:$4 sm:$0xff]  }
  0xcd   :  { %3781 = vmatprep.subr.bf16.mxu0 %v6490_v37  ;;  %3489 = vmatprep.mubr.bf16.mxu1 %v6571_v38  ;;  %v6664_v35 = vld [vmem:[%s9256_s0 + $0x13c] ss:$120 sps:$4 sm:$0xff]   ;;  %v6584_v37 = vld [vmem:[%s9257_s1 + $0xa10] ss:$8 sps:$4 sm:$0xff]   ;;  %v6589_v38 = vld [vmem:[%s9257_s1 + $0x424] ss:$8 sps:$4 sm:$0xff]  }
  0xce   :  { %3807 = vmatprep.mubr.bf16.mxu0 %v6577_v39  ;;  %v6592_v39 = vld [vmem:[%s9257_s1 + $0xa24] ss:$8 sps:$4 sm:$0xff]  }
  0xcf   :  { %3464 = vmatpush1.bf16.msra.mxu1 %v6485_v40  ;;  %v6587_v40 = vld [vmem:[%s9257_s1 + $0x420] ss:$8 sps:$4 sm:$0xff]  }
  0xd0   :  { %3782 = vmatpush1.bf16.msra.mxu0 %v6488_v41  ;;  %3465 = vmatprep.subr.bf16.mxu1 %v6493_v42  ;;  %v6590_v41 = vld [vmem:[%s9257_s1 + $0xa20] ss:$8 sps:$4 sm:$0xff]  }
  0xd1   :  { %3783 = vmatprep.subr.bf16.mxu0 %v6496_v43  ;;  %v6669_v42 = vld [vmem:[%s9256_s0 + $0x108] ss:$120 sps:$4 sm:$0xff]   ;;  %v6670_v43 = vld [vmem:[%s9256_s0 + $0x138] ss:$120 sps:$4 sm:$0xff]  }
  0xd3   :  { %3466 = vmatpush1.bf16.msra.mxu1 %v6491_v44  ;;  %v6595_v44 = vld [vmem:[%s9257_s1 + $0x434] ss:$8 sps:$4 sm:$0xff]  }
  0xd4   :  { %3784 = vmatpush1.bf16.msra.mxu0 %v6494_v45  ;;  %3467 = vmatprep.subr.bf16.mxu1 %v6499_v46  ;;  %v6598_v45 = vld [vmem:[%s9257_s1 + $0xa34] ss:$8 sps:$4 sm:$0xff]  }
  0xd5   :  { %3785 = vmatprep.subr.bf16.mxu0 %v6502_v47  ;;  %v6679_v46 = vld [vmem:[%s9256_s0 + $0x24] ss:$120 sps:$4 sm:$0xff]   ;;  %v6685_v47 = vld [vmem:[%s9256_s0 + $0x54] ss:$120 sps:$4 sm:$0xff]  }
  0xd7   :  { %3468 = vmatpush1.bf16.msra.mxu1 %v6497_v48  ;;  %v6593_v48 = vld [vmem:[%s9257_s1 + $0x430] ss:$8 sps:$4 sm:$0xff]  }
  0xd8   :  { %3786 = vmatpush1.bf16.msra.mxu0 %v6500_v49  ;;  %3469 = vmatprep.subr.bf16.mxu1 %v6505_v50  ;;  %v6596_v49 = vld [vmem:[%s9257_s1 + $0xa30] ss:$8 sps:$4 sm:$0xff]   ;;  %v6601_v50 = vld [vmem:[%s9257_s1 + $0x444] ss:$8 sps:$4 sm:$0xff]  }
  0xd9   :  { %3787 = vmatprep.subr.bf16.mxu0 %v6508_v51  ;;  %v6604_v51 = vld [vmem:[%s9257_s1 + $0xa44] ss:$8 sps:$4 sm:$0xff]  }
  0xdb   :  { %3470 = vmatpush1.bf16.msra.mxu1 %v6503_v52  ;;  %v6599_v52 = vld [vmem:[%s9257_s1 + $0x440] ss:$8 sps:$4 sm:$0xff]  }
  0xdc   :  { %3788 = vmatpush1.bf16.msra.mxu0 %v6506_v53  ;;  %3471 = vmatprep.subr.bf16.mxu1 %v6511_v54  ;;  %v6602_v53 = vld [vmem:[%s9257_s1 + $0xa40] ss:$8 sps:$4 sm:$0xff]   ;;  %v6607_v54 = vld [vmem:[%s9257_s1 + $0x454] ss:$8 sps:$4 sm:$0xff]  }
  0xdd   :  { %3789 = vmatprep.subr.bf16.mxu0 %v6514_v55  ;;  %v6610_v55 = vld [vmem:[%s9257_s1 + $0xa54] ss:$8 sps:$4 sm:$0xff]  }
  0xdf   :  { %3472 = vmatpush1.bf16.msra.mxu1 %v6509_v56  ;;  %v6605_v56 = vld [vmem:[%s9257_s1 + $0x450] ss:$8 sps:$4 sm:$0xff]  }
  0xe0   :  { %3790 = vmatpush1.bf16.msra.mxu0 %v6512_v57  ;;  %3473 = vmatprep.subr.bf16.mxu1 %v6517_v58  ;;  %v6608_v57 = vld [vmem:[%s9257_s1 + $0xa50] ss:$8 sps:$4 sm:$0xff]   ;;  %v6613_v58 = vld [vmem:[%s9257_s1 + $0x464] ss:$8 sps:$4 sm:$0xff]  }
  0xe1   :  { %3791 = vmatprep.subr.bf16.mxu0 %v6520_v59  ;;  %v6616_v59 = vld [vmem:[%s9257_s1 + $0xa64] ss:$8 sps:$4 sm:$0xff]  }
  0xe3   :  { %3474 = vmatpush1.bf16.msra.mxu1 %v6515_v60  ;;  %v6611_v60 = vld [vmem:[%s9257_s1 + $0x460] ss:$8 sps:$4 sm:$0xff]  }
  0xe4   :  { %3792 = vmatpush1.bf16.msra.mxu0 %v6518_v61  ;;  %3475 = vmatprep.subr.bf16.mxu1 %v6523_v62  ;;  %v6614_v61 = vld [vmem:[%s9257_s1 + $0xa60] ss:$8 sps:$4 sm:$0xff]   ;;  %v6619_v62 = vld [vmem:[%s9257_s1 + $0x474] ss:$8 sps:$4 sm:$0xff]  }
  0xe5   :  { %3793 = vmatprep.subr.bf16.mxu0 %v6526_v63  ;;  %v6622_v63 = vld [vmem:[%s9257_s1 + $0xa74] ss:$8 sps:$4 sm:$0xff]  }
  0xe7   :  { %3476 = vmatpush1.bf16.msra.mxu1 %v6521_v0  ;;  %v6617_v0 = vld [vmem:[%s9257_s1 + $0x470] ss:$8 sps:$4 sm:$0xff]  }
  0xe8   :  { %3794 = vmatpush1.bf16.msra.mxu0 %v6524_v1  ;;  %3477 = vmatprep.subr.bf16.mxu1 %v6529_v2  ;;  %v6620_v1 = vld [vmem:[%s9257_s1 + $0xa70] ss:$8 sps:$4 sm:$0xff]   ;;  %v6625_v2 = vld [vmem:[%s9257_s1 + $0x484] ss:$8 sps:$4 sm:$0xff]  }
  0xe9   :  { %3795 = vmatprep.subr.bf16.mxu0 %v6532_v3  ;;  %v6628_v3 = vld [vmem:[%s9257_s1 + $0xa84] ss:$8 sps:$4 sm:$0xff]  }
  0xeb   :  { %3478 = vmatpush1.bf16.msra.mxu1 %v6527_v4  ;;  %v6623_v4 = vld [vmem:[%s9257_s1 + $0x480] ss:$8 sps:$4 sm:$0xff]  }
  0xec   :  { %3796 = vmatpush1.bf16.msra.mxu0 %v6530_v5  ;;  %3479 = vmatprep.subr.bf16.mxu1 %v6535_v6  ;;  %v6626_v5 = vld [vmem:[%s9257_s1 + $0xa80] ss:$8 sps:$4 sm:$0xff]   ;;  %v6631_v6 = vld [vmem:[%s9257_s1 + $0x494] ss:$8 sps:$4 sm:$0xff]  }
  0xed   :  { %3797 = vmatprep.subr.bf16.mxu0 %v6538_v7  ;;  %v6634_v7 = vld [vmem:[%s9257_s1 + $0xa94] ss:$8 sps:$4 sm:$0xff]  }
  0xef   :  { %3480 = vmatpush1.bf16.msra.mxu1 %v6533_v8  ;;  %v6629_v8 = vld [vmem:[%s9257_s1 + $0x490] ss:$8 sps:$4 sm:$0xff]  }
  0xf0   :  { %3798 = vmatpush1.bf16.msra.mxu0 %v6536_v9  ;;  %3481 = vmatprep.subr.bf16.mxu1 %v6541_v10  ;;  %v6632_v9 = vld [vmem:[%s9257_s1 + $0xa90] ss:$8 sps:$4 sm:$0xff]   ;;  %v6637_v10 = vld [vmem:[%s9257_s1 + $0x4a4] ss:$8 sps:$4 sm:$0xff]  }
  0xf1   :  { %3799 = vmatprep.subr.bf16.mxu0 %v6544_v11  ;;  %v6640_v11 = vld [vmem:[%s9257_s1 + $0xaa4] ss:$8 sps:$4 sm:$0xff]  }
  0xf3   :  { %3482 = vmatpush1.bf16.msra.mxu1 %v6539_v12  ;;  %v6635_v12 = vld [vmem:[%s9257_s1 + $0x4a0] ss:$8 sps:$4 sm:$0xff]  }
  0xf4   :  { %3800 = vmatpush1.bf16.msra.mxu0 %v6542_v13  ;;  %3483 = vmatprep.subr.bf16.mxu1 %v6547_v14  ;;  %v6638_v13 = vld [vmem:[%s9257_s1 + $0xaa0] ss:$8 sps:$4 sm:$0xff]   ;;  %v6643_v14 = vld [vmem:[%s9257_s1 + $0x4b4] ss:$8 sps:$4 sm:$0xff]  }
  0xf5   :  { %3801 = vmatprep.subr.bf16.mxu0 %v6550_v15  ;;  %v6646_v15 = vld [vmem:[%s9257_s1 + $0xab4] ss:$8 sps:$4 sm:$0xff]  }
  0xf7   :  { %3484 = vmatpush1.bf16.msra.mxu1 %v6545_v16  ;;  %v6641_v16 = vld [vmem:[%s9257_s1 + $0x4b0] ss:$8 sps:$4 sm:$0xff]  }
  0xf8   :  { %3802 = vmatpush1.bf16.msra.mxu0 %v6548_v17  ;;  %3485 = vmatprep.subr.bf16.mxu1 %v6555_v18  ;;  %v6644_v17 = vld [vmem:[%s9257_s1 + $0xab0] ss:$8 sps:$4 sm:$0xff]   ;;  %v6649_v18 = vld [vmem:[%s9257_s1 + $0x4c4] ss:$8 sps:$4 sm:$0xff]  }
  0xf9   :  { %3803 = vmatprep.subr.bf16.mxu0 %v6560_v19  ;;  %v6652_v19 = vld [vmem:[%s9257_s1 + $0xac4] ss:$8 sps:$4 sm:$0xff]  }
  0xfb   :  { %3486 = vmatpush1.bf16.msra.mxu1 %v6553_v20  ;;  %v6647_v20 = vld [vmem:[%s9257_s1 + $0x4c0] ss:$8 sps:$4 sm:$0xff]  }
  0xfc   :  { %3804 = vmatpush1.bf16.msra.mxu0 %v6558_v21  ;;  %3487 = vmatprep.subr.bf16.mxu1 %v6565_v22  ;;  %v6650_v21 = vld [vmem:[%s9257_s1 + $0xac0] ss:$8 sps:$4 sm:$0xff]   ;;  %v6655_v22 = vld [vmem:[%s9257_s1 + $0x4d4] ss:$8 sps:$4 sm:$0xff]  }
  0xfd   :  { %3805 = vmatprep.subr.bf16.mxu0 %v6568_v23  ;;  %v6658_v23 = vld [vmem:[%s9257_s1 + $0xad4] ss:$8 sps:$4 sm:$0xff]  }
  0xff   :  { %3488 = vmatpush1.bf16.msra.mxu1 %v6563_v24  ;;  %v6653_v24 = vld [vmem:[%s9257_s1 + $0x4d0] ss:$8 sps:$4 sm:$0xff]  }
 0x100   :  { %3806 = vmatpush1.bf16.msra.mxu0 %v6566_v25  ;;  %3510 = vmatprep.subr.bf16.mxu1 %v6574_v26  ;;  %v6656_v25 = vld [vmem:[%s9257_s1 + $0xad0] ss:$8 sps:$4 sm:$0xff]   ;;  %v6663_v26 = vld [vmem:[%s9257_s1 + $0x4e4] ss:$8 sps:$4 sm:$0xff]  }
 0x101   :  { %3828 = vmatprep.subr.bf16.mxu0 %v6580_v27  ;;  %v6668_v27 = vld [vmem:[%s9257_s1 + $0xae4] ss:$8 sps:$4 sm:$0xff]  }
 0x102   :  { %3490 = vmatmul.mubr.bf16.vlgmr.msra.gmra.mrb[0].mxu1 %v6569_v28  ;;  %v6661_v28 = vld [vmem:[%s9257_s1 + $0x4e0] ss:$8 sps:$4 sm:$0xff]  }
 0x103   :  { %3808 = vmatmul.mubr.bf16.vlgmr.msra.gmra.mrb[0].mxu0 %v6575_v30  ;;  %3511 = vmatpush1.bf16.msra.mxu1 %v6572_v29  ;;  %v6666_v29 = vld [vmem:[%s9257_s1 + $0xae0] ss:$8 sps:$4 sm:$0xff]   ;;  %v6673_v30 = vld [vmem:[%s9257_s1 + $0x4f4] ss:$8 sps:$4 sm:$0xff]  }
 0x104   :  { %3829 = vmatpush1.bf16.msra.mxu0 %v6578_v31  ;;  %3512 = vmatprep.subr.bf16.mxu1 %v6583_v32  ;;  %v6676_v31 = vld [vmem:[%s9257_s1 + $0xaf4] ss:$8 sps:$4 sm:$0xff]   ;;  %v6671_v32 = vld [vmem:[%s9257_s1 + $0x4f0] ss:$8 sps:$4 sm:$0xff]  }
 0x105   :  { %3830 = vmatprep.subr.bf16.mxu0 %v6586_v33  ;;  %3499 = vmatprep.mubr.bf16.mxu1 %v6659_v34  ;;  %v6674_v33 = vld [vmem:[%s9257_s1 + $0xaf0] ss:$8 sps:$4 sm:$0xff]   ;;  %v6682_v34 = vld [vmem:[%s9257_s1 + $0x504] ss:$8 sps:$4 sm:$0xff]  }
 0x106   :  { %3817 = vmatprep.mubr.bf16.mxu0 %v6664_v35  ;;  %v6688_v35 = vld [vmem:[%s9257_s1 + $0xb04] ss:$8 sps:$4 sm:$0xff]  }
 0x107   :  { %3513 = vmatpush1.bf16.msra.mxu1 %v6581_v36  ;;  %v6677_v36 = vld [vmem:[%s9256_s0 + $0x20] ss:$120 sps:$4 sm:$0xff]  }
 0x108   :  { %3831 = vmatpush1.bf16.msra.mxu0 %v6584_v37  ;;  %3514 = vmatprep.subr.bf16.mxu1 %v6589_v38  ;;  %v6683_v37 = vld [vmem:[%s9256_s0 + $0x50] ss:$120 sps:$4 sm:$0xff]  }
 0x109   :  { %3832 = vmatprep.subr.bf16.mxu0 %v6592_v39  ;;  %v6680_v38 = vld [vmem:[%s9257_s1 + $0x500] ss:$8 sps:$4 sm:$0xff]  }
 0x10a   :  { %3500 = vmatmul.mubr.bf16.gmra.mrb[4].mxu1 %v6669_v42  ;;  %v6686_v39 = vld [vmem:[%s9257_s1 + $0xb00] ss:$8 sps:$4 sm:$0xff]   ;;  %v6767_v42 = vld [vmem:[%s9256_s0 + $0x114] ss:$120 sps:$4 sm:$0xff]  }
 0x10b   :  { %3818 = vmatmul.mubr.bf16.gmra.mrb[4].mxu0 %v6670_v43  ;;  %3515 = vmatpush1.bf16.msra.mxu1 %v6587_v40  ;;  %v6691_v40 = vld [vmem:[%s9257_s1 + $0x514] ss:$8 sps:$4 sm:$0xff]  }
 0x10c   :  { %3833 = vmatpush1.bf16.msra.mxu0 %v6590_v41  ;;  %3516 = vmatprep.subr.bf16.mxu1 %v6595_v44  ;;  %v6694_v41 = vld [vmem:[%s9257_s1 + $0xb14] ss:$8 sps:$4 sm:$0xff]   ;;  %v6689_v44 = vld [vmem:[%s9257_s1 + $0x510] ss:$8 sps:$4 sm:$0xff]  }
 0x10d   :  { %3834 = vmatprep.subr.bf16.mxu0 %v6598_v45  ;;  %3542 = vmatprep.mubr.bf16.mxu1 %v6679_v46  ;;  %v6773_v43 = vld [vmem:[%s9256_s0 + $0x144] ss:$120 sps:$4 sm:$0xff]   ;;  %v6692_v45 = vld [vmem:[%s9257_s1 + $0xb10] ss:$8 sps:$4 sm:$0xff]  }
 0x10e   :  { %3860 = vmatprep.mubr.bf16.mxu0 %v6685_v47  ;;  %v6697_v46 = vld [vmem:[%s9257_s1 + $0x524] ss:$8 sps:$4 sm:$0xff]  }
 0x10f   :  { %3517 = vmatpush1.bf16.msra.mxu1 %v6593_v48  ;;  %v6700_v47 = vld [vmem:[%s9257_s1 + $0xb24] ss:$8 sps:$4 sm:$0xff]   ;;  %v6769_v48 = vld [vmem:[%s9256_s0 + $0x110] ss:$120 sps:$4 sm:$0xff]  }
 0x110   :  { %3835 = vmatpush1.bf16.msra.mxu0 %v6596_v49  ;;  %3518 = vmatprep.subr.bf16.mxu1 %v6601_v50  ;;  %v6778_v49 = vld [vmem:[%s9256_s0 + $0x140] ss:$120 sps:$4 sm:$0xff]  }
 0x111   :  { %3836 = vmatprep.subr.bf16.mxu0 %v6604_v51  ;;  %v6695_v50 = vld [vmem:[%s9257_s1 + $0x520] ss:$8 sps:$4 sm:$0xff]  }
 0x112   :  { %v6698_v51 = vld [vmem:[%s9257_s1 + $0xb20] ss:$8 sps:$4 sm:$0xff]  }
 0x113   :  { %3519 = vmatpush1.bf16.msra.mxu1 %v6599_v52  ;;  %v6703_v52 = vld [vmem:[%s9257_s1 + $0x534] ss:$8 sps:$4 sm:$0xff]  }
 0x114   :  { %3837 = vmatpush1.bf16.msra.mxu0 %v6602_v53  ;;  %3520 = vmatprep.subr.bf16.mxu1 %v6607_v54  ;;  %v6706_v53 = vld [vmem:[%s9257_s1 + $0xb34] ss:$8 sps:$4 sm:$0xff]   ;;  %v6787_v54 = vld [vmem:[%s9256_s0 + $0x2c] ss:$120 sps:$4 sm:$0xff]  }
 0x115   :  { %3838 = vmatprep.subr.bf16.mxu0 %v6610_v55  ;;  %v6790_v55 = vld [vmem:[%s9256_s0 + $0x5c] ss:$120 sps:$4 sm:$0xff]  }
 0x117   :  { %3521 = vmatpush1.bf16.msra.mxu1 %v6605_v56  ;;  %v6701_v56 = vld [vmem:[%s9257_s1 + $0x530] ss:$8 sps:$4 sm:$0xff]  }
 0x118   :  { %3839 = vmatpush1.bf16.msra.mxu0 %v6608_v57  ;;  %3522 = vmatprep.subr.bf16.mxu1 %v6613_v58  ;;  %v6704_v57 = vld [vmem:[%s9257_s1 + $0xb30] ss:$8 sps:$4 sm:$0xff]   ;;  %v6709_v58 = vld [vmem:[%s9257_s1 + $0x544] ss:$8 sps:$4 sm:$0xff]  }
 0x119   :  { %3840 = vmatprep.subr.bf16.mxu0 %v6616_v59  ;;  %v6712_v59 = vld [vmem:[%s9257_s1 + $0xb44] ss:$8 sps:$4 sm:$0xff]  }
 0x11b   :  { %3523 = vmatpush1.bf16.msra.mxu1 %v6611_v60  ;;  %v6707_v60 = vld [vmem:[%s9257_s1 + $0x540] ss:$8 sps:$4 sm:$0xff]  }
 0x11c   :  { %3841 = vmatpush1.bf16.msra.mxu0 %v6614_v61  ;;  %3524 = vmatprep.subr.bf16.mxu1 %v6619_v62  ;;  %v6710_v61 = vld [vmem:[%s9257_s1 + $0xb40] ss:$8 sps:$4 sm:$0xff]   ;;  %v6715_v62 = vld [vmem:[%s9257_s1 + $0x554] ss:$8 sps:$4 sm:$0xff]  }
 0x11d   :  { %3842 = vmatprep.subr.bf16.mxu0 %v6622_v63  ;;  %v6718_v63 = vld [vmem:[%s9257_s1 + $0xb54] ss:$8 sps:$4 sm:$0xff]  }
 0x11f   :  { %3525 = vmatpush1.bf16.msra.mxu1 %v6617_v0  ;;  %v6713_v0 = vld [vmem:[%s9257_s1 + $0x550] ss:$8 sps:$4 sm:$0xff]  }
 0x120   :  { %3843 = vmatpush1.bf16.msra.mxu0 %v6620_v1  ;;  %3526 = vmatprep.subr.bf16.mxu1 %v6625_v2  ;;  %v6716_v1 = vld [vmem:[%s9257_s1 + $0xb50] ss:$8 sps:$4 sm:$0xff]   ;;  %v6721_v2 = vld [vmem:[%s9257_s1 + $0x564] ss:$8 sps:$4 sm:$0xff]  }
 0x121   :  { %3844 = vmatprep.subr.bf16.mxu0 %v6628_v3  ;;  %v6724_v3 = vld [vmem:[%s9257_s1 + $0xb64] ss:$8 sps:$4 sm:$0xff]  }
 0x123   :  { %3527 = vmatpush1.bf16.msra.mxu1 %v6623_v4  ;;  %v6719_v4 = vld [vmem:[%s9257_s1 + $0x560] ss:$8 sps:$4 sm:$0xff]  }
 0x124   :  { %3845 = vmatpush1.bf16.msra.mxu0 %v6626_v5  ;;  %3528 = vmatprep.subr.bf16.mxu1 %v6631_v6  ;;  %v6722_v5 = vld [vmem:[%s9257_s1 + $0xb60] ss:$8 sps:$4 sm:$0xff]   ;;  %v6727_v6 = vld [vmem:[%s9257_s1 + $0x574] ss:$8 sps:$4 sm:$0xff]  }
 0x125   :  { %3846 = vmatprep.subr.bf16.mxu0 %v6634_v7  ;;  %v6730_v7 = vld [vmem:[%s9257_s1 + $0xb74] ss:$8 sps:$4 sm:$0xff]  }
 0x127   :  { %3529 = vmatpush1.bf16.msra.mxu1 %v6629_v8  ;;  %v6725_v8 = vld [vmem:[%s9257_s1 + $0x570] ss:$8 sps:$4 sm:$0xff]  }
 0x128   :  { %3847 = vmatpush1.bf16.msra.mxu0 %v6632_v9  ;;  %3530 = vmatprep.subr.bf16.mxu1 %v6637_v10  ;;  %v6728_v9 = vld [vmem:[%s9257_s1 + $0xb70] ss:$8 sps:$4 sm:$0xff]   ;;  %v6733_v10 = vld [vmem:[%s9257_s1 + $0x584] ss:$8 sps:$4 sm:$0xff]  }
 0x129   :  { %3848 = vmatprep.subr.bf16.mxu0 %v6640_v11  ;;  %v6736_v11 = vld [vmem:[%s9257_s1 + $0xb84] ss:$8 sps:$4 sm:$0xff]  }
 0x12b   :  { %3531 = vmatpush1.bf16.msra.mxu1 %v6635_v12  ;;  %v6731_v12 = vld [vmem:[%s9257_s1 + $0x580] ss:$8 sps:$4 sm:$0xff]  }
 0x12c   :  { %3849 = vmatpush1.bf16.msra.mxu0 %v6638_v13  ;;  %3532 = vmatprep.subr.bf16.mxu1 %v6643_v14  ;;  %v6734_v13 = vld [vmem:[%s9257_s1 + $0xb80] ss:$8 sps:$4 sm:$0xff]   ;;  %v6739_v14 = vld [vmem:[%s9257_s1 + $0x594] ss:$8 sps:$4 sm:$0xff]  }
 0x12d   :  { %3850 = vmatprep.subr.bf16.mxu0 %v6646_v15  ;;  %v6742_v15 = vld [vmem:[%s9257_s1 + $0xb94] ss:$8 sps:$4 sm:$0xff]  }
 0x12f   :  { %3533 = vmatpush1.bf16.msra.mxu1 %v6641_v16  ;;  %v6737_v16 = vld [vmem:[%s9257_s1 + $0x590] ss:$8 sps:$4 sm:$0xff]  }
 0x130   :  { %3851 = vmatpush1.bf16.msra.mxu0 %v6644_v17  ;;  %3534 = vmatprep.subr.bf16.mxu1 %v6649_v18  ;;  %v6740_v17 = vld [vmem:[%s9257_s1 + $0xb90] ss:$8 sps:$4 sm:$0xff]   ;;  %v6745_v18 = vld [vmem:[%s9257_s1 + $0x5a4] ss:$8 sps:$4 sm:$0xff]  }
 0x131   :  { %3852 = vmatprep.subr.bf16.mxu0 %v6652_v19  ;;  %v6748_v19 = vld [vmem:[%s9257_s1 + $0xba4] ss:$8 sps:$4 sm:$0xff]  }
 0x133   :  { %3535 = vmatpush1.bf16.msra.mxu1 %v6647_v20  ;;  %v6743_v20 = vld [vmem:[%s9257_s1 + $0x5a0] ss:$8 sps:$4 sm:$0xff]  }
 0x134   :  { %3853 = vmatpush1.bf16.msra.mxu0 %v6650_v21  ;;  %3536 = vmatprep.subr.bf16.mxu1 %v6655_v22  ;;  %v6746_v21 = vld [vmem:[%s9257_s1 + $0xba0] ss:$8 sps:$4 sm:$0xff]   ;;  %v6751_v22 = vld [vmem:[%s9257_s1 + $0x5b4] ss:$8 sps:$4 sm:$0xff]  }
 0x135   :  { %3854 = vmatprep.subr.bf16.mxu0 %v6658_v23  ;;  %v6754_v23 = vld [vmem:[%s9257_s1 + $0xbb4] ss:$8 sps:$4 sm:$0xff]  }
 0x137   :  { %3537 = vmatpush1.bf16.msra.mxu1 %v6653_v24  ;;  %v6749_v24 = vld [vmem:[%s9257_s1 + $0x5b0] ss:$8 sps:$4 sm:$0xff]  }
 0x138   :  { %3855 = vmatpush1.bf16.msra.mxu0 %v6656_v25  ;;  %3538 = vmatprep.subr.bf16.mxu1 %v6663_v26  ;;  %v6752_v25 = vld [vmem:[%s9257_s1 + $0xbb0] ss:$8 sps:$4 sm:$0xff]   ;;  %v6757_v26 = vld [vmem:[%s9257_s1 + $0x5c4] ss:$8 sps:$4 sm:$0xff]  }
 0x139   :  { %3856 = vmatprep.subr.bf16.mxu0 %v6668_v27  ;;  %v6760_v27 = vld [vmem:[%s9257_s1 + $0xbc4] ss:$8 sps:$4 sm:$0xff]  }
 0x13b   :  { %3539 = vmatpush1.bf16.msra.mxu1 %v6661_v28  ;;  %v6755_v28 = vld [vmem:[%s9257_s1 + $0x5c0] ss:$8 sps:$4 sm:$0xff]  }
 0x13c   :  { %3857 = vmatpush1.bf16.msra.mxu0 %v6666_v29  ;;  %3540 = vmatprep.subr.bf16.mxu1 %v6673_v30  ;;  %v6758_v29 = vld [vmem:[%s9257_s1 + $0xbc0] ss:$8 sps:$4 sm:$0xff]   ;;  %v6763_v30 = vld [vmem:[%s9257_s1 + $0x5d4] ss:$8 sps:$4 sm:$0xff]  }
 0x13d   :  { %3858 = vmatprep.subr.bf16.mxu0 %v6676_v31  ;;  %v6766_v31 = vld [vmem:[%s9257_s1 + $0xbd4] ss:$8 sps:$4 sm:$0xff]  }
 0x13f   :  { %3541 = vmatpush1.bf16.msra.mxu1 %v6671_v32  ;;  %v6761_v32 = vld [vmem:[%s9257_s1 + $0x5d0] ss:$8 sps:$4 sm:$0xff]  }
 0x140   :  { %3859 = vmatpush1.bf16.msra.mxu0 %v6674_v33  ;;  %3563 = vmatprep.subr.bf16.mxu1 %v6682_v34  ;;  %v6764_v33 = vld [vmem:[%s9257_s1 + $0xbd0] ss:$8 sps:$4 sm:$0xff]   ;;  %v6772_v34 = vld [vmem:[%s9257_s1 + $0x5e4] ss:$8 sps:$4 sm:$0xff]  }
 0x141   :  { %3881 = vmatprep.subr.bf16.mxu0 %v6688_v35  ;;  %v6777_v35 = vld [vmem:[%s9257_s1 + $0xbe4] ss:$8 sps:$4 sm:$0xff]  }
 0x142   :  { %3543 = vmatmul.mubr.bf16.vlgmr.msra.gmra.mrb[0].mxu1 %v6677_v36  ;;  %v6770_v36 = vld [vmem:[%s9257_s1 + $0x5e0] ss:$8 sps:$4 sm:$0xff]  }
 0x143   :  { %3861 = vmatmul.mubr.bf16.vlgmr.msra.gmra.mrb[0].mxu0 %v6683_v37  ;;  %3564 = vmatpush1.bf16.msra.mxu1 %v6680_v38  ;;  %v6775_v37 = vld [vmem:[%s9257_s1 + $0xbe0] ss:$8 sps:$4 sm:$0xff]   ;;  %v6781_v38 = vld [vmem:[%s9257_s1 + $0x5f4] ss:$8 sps:$4 sm:$0xff]  }
 0x144   :  { %3882 = vmatpush1.bf16.msra.mxu0 %v6686_v39  ;;  %3565 = vmatprep.subr.bf16.mxu1 %v6691_v40  ;;  %v6784_v39 = vld [vmem:[%s9257_s1 + $0xbf4] ss:$8 sps:$4 sm:$0xff]   ;;  %v6779_v40 = vld [vmem:[%s9257_s1 + $0x5f0] ss:$8 sps:$4 sm:$0xff]  }
 0x145   :  { %3883 = vmatprep.subr.bf16.mxu0 %v6694_v41  ;;  %3552 = vmatprep.mubr.bf16.mxu1 %v6767_v42  ;;  %v6782_v41 = vld [vmem:[%s9257_s1 + $0xbf0] ss:$8 sps:$4 sm:$0xff]   ;;  %v6793_v42 = vld [vmem:[%s9257_s1 + $0xc04] ss:$8 sps:$4 sm:$0xff]  }
 0x146   :  { %3870 = vmatprep.mubr.bf16.mxu0 %v6773_v43  ;;  %v6785_v43 = vld [vmem:[%s9256_s0 + $0x28] ss:$120 sps:$4 sm:$0xff]  }
 0x147   :  { %3566 = vmatpush1.bf16.msra.mxu1 %v6689_v44  ;;  %v6788_v44 = vld [vmem:[%s9256_s0 + $0x58] ss:$120 sps:$4 sm:$0xff]  }
 0x148   :  { %3884 = vmatpush1.bf16.msra.mxu0 %v6692_v45  ;;  %3567 = vmatprep.subr.bf16.mxu1 %v6697_v46  ;;  %v6791_v45 = vld [vmem:[%s9257_s1 + $0xc00] ss:$8 sps:$4 sm:$0xff]   ;;  %v6796_v46 = vld [vmem:[%s9257_s1 + $0xc14] ss:$8 sps:$4 sm:$0xff]  }
 0x149   :  { %3885 = vmatprep.subr.bf16.mxu0 %v6700_v47  ;;  %v6797_v47 = vld [vmem:[%s9256_s0 + $0x11c] ss:$120 sps:$4 sm:$0xff]  }
 0x14a   :  { %3553 = vmatmul.mubr.bf16.gmra.mrb[4].mxu1 %v6769_v48  ;;  %v6836_v48 = vld [vmem:[%s9256_s0 + $0x14c] ss:$120 sps:$4 sm:$0xff]  }
 0x14b   :  { %3871 = vmatmul.mubr.bf16.gmra.mrb[4].mxu0 %v6778_v49  ;;  %3568 = vmatpush1.bf16.msra.mxu1 %v6695_v50  ;;  %v6794_v49 = vld [vmem:[%s9257_s1 + $0xc10] ss:$8 sps:$4 sm:$0xff]   ;;  %v6802_v50 = vld [vmem:[%s9257_s1 + $0xc24] ss:$8 sps:$4 sm:$0xff]  }
 0x14c   :  { %3886 = vmatpush1.bf16.msra.mxu0 %v6698_v51  ;;  %3569 = vmatprep.subr.bf16.mxu1 %v6703_v52  ;;  %v6799_v51 = vld [vmem:[%s9256_s0 + $0x118] ss:$120 sps:$4 sm:$0xff]   ;;  %v6841_v52 = vld [vmem:[%s9256_s0 + $0x148] ss:$120 sps:$4 sm:$0xff]  }
 0x14d   :  { %3887 = vmatprep.subr.bf16.mxu0 %v6706_v53  ;;  %3595 = vmatprep.mubr.bf16.mxu1 %v6787_v54  ;;  %v6800_v53 = vld [vmem:[%s9257_s1 + $0xc20] ss:$8 sps:$4 sm:$0xff]   ;;  %v6805_v54 = vld [vmem:[%s9257_s1 + $0xc34] ss:$8 sps:$4 sm:$0xff]  }
 0x14e   :  { %3913 = vmatprep.mubr.bf16.mxu0 %v6790_v55  ;;  %v6847_v55 = vld [vmem:[%s9256_s0 + $0x64] ss:$120 sps:$4 sm:$0xff]  }
 0x14f   :  { %3570 = vmatpush1.bf16.msra.mxu1 %v6701_v56  ;;  %v6803_v56 = vld [vmem:[%s9257_s1 + $0xc30] ss:$8 sps:$4 sm:$0xff]  }
 0x150   :  { %3888 = vmatpush1.bf16.msra.mxu0 %v6704_v57  ;;  %3571 = vmatprep.subr.bf16.mxu1 %v6709_v58  ;;  %v6808_v57 = vld [vmem:[%s9257_s1 + $0xc44] ss:$8 sps:$4 sm:$0xff]   ;;  %v6806_v58 = vld [vmem:[%s9257_s1 + $0xc40] ss:$8 sps:$4 sm:$0xff]  }
 0x151   :  { %3889 = vmatprep.subr.bf16.mxu0 %v6712_v59  ;;  %v6811_v59 = vld [vmem:[%s9257_s1 + $0xc54] ss:$8 sps:$4 sm:$0xff]  }
 0x153   :  { %3572 = vmatpush1.bf16.msra.mxu1 %v6707_v60 }
 0x154   :  { %3890 = vmatpush1.bf16.msra.mxu0 %v6710_v61  ;;  %3573 = vmatprep.subr.bf16.mxu1 %v6715_v62 }
 0x155   :  { %3891 = vmatprep.subr.bf16.mxu0 %v6718_v63 }
 0x157   :  { %3574 = vmatpush1.bf16.msra.mxu1 %v6713_v0 }
 0x158   :  { %3892 = vmatpush1.bf16.msra.mxu0 %v6716_v1  ;;  %3575 = vmatprep.subr.bf16.mxu1 %v6721_v2 }
 0x159   :  { %3893 = vmatprep.subr.bf16.mxu0 %v6724_v3 }
 0x15b   :  { %3576 = vmatpush1.bf16.msra.mxu1 %v6719_v4 }
 0x15c   :  { %3894 = vmatpush1.bf16.msra.mxu0 %v6722_v5  ;;  %3577 = vmatprep.subr.bf16.mxu1 %v6727_v6 }
 0x15d   :  { %3895 = vmatprep.subr.bf16.mxu0 %v6730_v7 }
 0x15f   :  { %3578 = vmatpush1.bf16.msra.mxu1 %v6725_v8 }
 0x160   :  { %3896 = vmatpush1.bf16.msra.mxu0 %v6728_v9  ;;  %3579 = vmatprep.subr.bf16.mxu1 %v6733_v10 }
 0x161   :  { %3897 = vmatprep.subr.bf16.mxu0 %v6736_v11 }
 0x163   :  { %3580 = vmatpush1.bf16.msra.mxu1 %v6731_v12 }
 0x164   :  { %3898 = vmatpush1.bf16.msra.mxu0 %v6734_v13  ;;  %3581 = vmatprep.subr.bf16.mxu1 %v6739_v14 }
 0x165   :  { %3899 = vmatprep.subr.bf16.mxu0 %v6742_v15 }
 0x167   :  { %3582 = vmatpush1.bf16.msra.mxu1 %v6737_v16 }
 0x168   :  { %3900 = vmatpush1.bf16.msra.mxu0 %v6740_v17  ;;  %3583 = vmatprep.subr.bf16.mxu1 %v6745_v18 }
 0x169   :  { %3901 = vmatprep.subr.bf16.mxu0 %v6748_v19 }
 0x16b   :  { %3584 = vmatpush1.bf16.msra.mxu1 %v6743_v20 }
 0x16c   :  { %3902 = vmatpush1.bf16.msra.mxu0 %v6746_v21  ;;  %3585 = vmatprep.subr.bf16.mxu1 %v6751_v22 }
 0x16d   :  { %3903 = vmatprep.subr.bf16.mxu0 %v6754_v23 }
 0x16f   :  { %3586 = vmatpush1.bf16.msra.mxu1 %v6749_v24 }
 0x170   :  { %3904 = vmatpush1.bf16.msra.mxu0 %v6752_v25  ;;  %3587 = vmatprep.subr.bf16.mxu1 %v6757_v26 }
 0x171   :  { %3905 = vmatprep.subr.bf16.mxu0 %v6760_v27 }
 0x173   :  { %3588 = vmatpush1.bf16.msra.mxu1 %v6755_v28 }
 0x174   :  { %3906 = vmatpush1.bf16.msra.mxu0 %v6758_v29  ;;  %3589 = vmatprep.subr.bf16.mxu1 %v6763_v30 }
 0x175   :  { %3907 = vmatprep.subr.bf16.mxu0 %v6766_v31 }
 0x177   :  { %3590 = vmatpush1.bf16.msra.mxu1 %v6761_v32 }
 0x178   :  { %3908 = vmatpush1.bf16.msra.mxu0 %v6764_v33  ;;  %3591 = vmatprep.subr.bf16.mxu1 %v6772_v34 }
 0x179   :  { %3909 = vmatprep.subr.bf16.mxu0 %v6777_v35 }
 0x17b   :  { %3592 = vmatpush1.bf16.msra.mxu1 %v6770_v36 }
 0x17c   :  { %3910 = vmatpush1.bf16.msra.mxu0 %v6775_v37  ;;  %3593 = vmatprep.subr.bf16.mxu1 %v6781_v38 }
 0x17d   :  { %3911 = vmatprep.subr.bf16.mxu0 %v6784_v39 }
 0x17f   :  { %3594 = vmatpush1.bf16.msra.mxu1 %v6779_v40 }
 0x180   :  { %3912 = vmatpush1.bf16.msra.mxu0 %v6782_v41 }
 0x181   :  { %3934 = vmatprep.subr.bf16.mxu0 %v6793_v42 }
 0x182   :  { %3596 = vmatmul.mubr.bf16.vlgmr.msra.gmra.mrb[0].mxu1 %v6785_v43 }
 0x183   :  { %3914 = vmatmul.mubr.bf16.vlgmr.msra.gmra.mrb[0].mxu0 %v6788_v44  ;;  %3605 = vmatprep.mubr.bf16.mxu1 %v6797_v47 }
 0x184   :  { %3935 = vmatpush1.bf16.msra.mxu0 %v6791_v45  ;;  %3923 = vmatprep.mubr.bf16.mxu0 %v6836_v48 }
 0x185   :  { %3936 = vmatprep.subr.bf16.mxu0 %v6796_v46 }
 0x188   :  { %3937 = vmatpush1.bf16.msra.mxu0 %v6794_v49 }
 0x189   :  { %3938 = vmatprep.subr.bf16.mxu0 %v6802_v50 }
 0x18a   :  { %3606 = vmatmul.mubr.bf16.gmra.mrb[4].mxu1 %v6799_v51 }
 0x18b   :  { %3924 = vmatmul.mubr.bf16.gmra.mrb[4].mxu0 %v6841_v52 }
 0x18c   :  { %3939 = vmatpush1.bf16.msra.mxu0 %v6800_v53  ;;  %3966 = vmatprep.mubr.bf16.mxu0 %v6847_v55 }
 0x18d   :  { %3940 = vmatprep.subr.bf16.mxu0 %v6805_v54 }
 0x190   :  { %3941 = vmatpush1.bf16.msra.mxu0 %v6803_v56 }
 0x191   :  { %3942 = vmatprep.subr.bf16.mxu0 %v6808_v57 }
 0x192   :  { %18 = vsyncpa [#allocation3], 0  ;;  %v6809_v60 = vld [vmem:[%s9257_s1 + $0xc50] ss:$8 sps:$4 sm:$0xff]   ;;  %v6814_v61 = vld [vmem:[%s9257_s1 + $0xc64] ss:$8 sps:$4 sm:$0xff]  }
 0x193   :  { %v6812_v62 = vld [vmem:[%s9257_s1 + $0xc60] ss:$8 sps:$4 sm:$0xff]   ;;  %v6817_v63 = vld [vmem:[%s9257_s1 + $0xc74] ss:$8 sps:$4 sm:$0xff]   ;;  %v6815_v0 = vld [vmem:[%s9257_s1 + $0xc70] ss:$8 sps:$4 sm:$0xff]  }
 0x194   :  { %3943 = vmatpush1.bf16.msra.mxu0 %v6806_v58  ;;  %v6820_v1 = vld [vmem:[%s9257_s1 + $0xc84] ss:$8 sps:$4 sm:$0xff]   ;;  %v6818_v2 = vld [vmem:[%s9257_s1 + $0xc80] ss:$8 sps:$4 sm:$0xff]   ;;  %v6823_v3 = vld [vmem:[%s9257_s1 + $0xc94] ss:$8 sps:$4 sm:$0xff]  }
 0x195   :  { %3944 = vmatprep.subr.bf16.mxu0 %v6811_v59  ;;  %v6821_v4 = vld [vmem:[%s9257_s1 + $0xc90] ss:$8 sps:$4 sm:$0xff]   ;;  %v6826_v5 = vld [vmem:[%s9257_s1 + $0xca4] ss:$8 sps:$4 sm:$0xff]   ;;  %v6824_v6 = vld [vmem:[%s9257_s1 + $0xca0] ss:$8 sps:$4 sm:$0xff]  }
 0x196   :  { %v6829_v7 = vld [vmem:[%s9257_s1 + $0xcb4] ss:$8 sps:$4 sm:$0xff]   ;;  %v6827_v8 = vld [vmem:[%s9257_s1 + $0xcb0] ss:$8 sps:$4 sm:$0xff]   ;;  %v6832_v9 = vld [vmem:[%s9257_s1 + $0xcc4] ss:$8 sps:$4 sm:$0xff]  }
 0x197   :  { %v6830_v10 = vld [vmem:[%s9257_s1 + $0xcc0] ss:$8 sps:$4 sm:$0xff]   ;;  %v6835_v11 = vld [vmem:[%s9257_s1 + $0xcd4] ss:$8 sps:$4 sm:$0xff]   ;;  %v6833_v12 = vld [vmem:[%s9257_s1 + $0xcd0] ss:$8 sps:$4 sm:$0xff]  }
 0x198   :  { %3945 = vmatpush1.bf16.msra.mxu0 %v6809_v60  ;;  %v6840_v13 = vld [vmem:[%s9257_s1 + $0xce4] ss:$8 sps:$4 sm:$0xff]   ;;  %v6838_v14 = vld [vmem:[%s9257_s1 + $0xce0] ss:$8 sps:$4 sm:$0xff]   ;;  %v6844_v15 = vld [vmem:[%s9257_s1 + $0xcf4] ss:$8 sps:$4 sm:$0xff]  }
 0x199   :  { %3946 = vmatprep.subr.bf16.mxu0 %v6814_v61  ;;  %v6842_v16 = vld [vmem:[%s9257_s1 + $0xcf0] ss:$8 sps:$4 sm:$0xff]   ;;  %v6850_v17 = vld [vmem:[%s9257_s1 + $0xd04] ss:$8 sps:$4 sm:$0xff]   ;;  %v6848_v19 = vld [vmem:[%s9257_s1 + $0xd00] ss:$8 sps:$4 sm:$0xff]  }
 0x19a   :  { %v6845_v18 = vld [vmem:[%s9256_s0 + $0x60] ss:$120 sps:$4 sm:$0xff]   ;;  %v6890_v20 = vld [vmem:[%s9256_s0 + $0x154] ss:$120 sps:$4 sm:$0xff]   ;;  %v6895_v24 = vld [vmem:[%s9256_s0 + $0x150] ss:$120 sps:$4 sm:$0xff]  }
 0x19b   :  { %v6853_v21 = vld [vmem:[%s9257_s1 + $0xd14] ss:$8 sps:$4 sm:$0xff]   ;;  %v6851_v22 = vld [vmem:[%s9257_s1 + $0xd10] ss:$8 sps:$4 sm:$0xff]   ;;  %v6856_v23 = vld [vmem:[%s9257_s1 + $0xd24] ss:$8 sps:$4 sm:$0xff]  }
 0x19c   :  { %3947 = vmatpush1.bf16.msra.mxu0 %v6812_v62  ;;  %v6854_v25 = vld [vmem:[%s9257_s1 + $0xd20] ss:$8 sps:$4 sm:$0xff]   ;;  %v6901_v26 = vld [vmem:[%s9256_s0 + $0x6c] ss:$120 sps:$4 sm:$0xff]   ;;  %v6859_v27 = vld [vmem:[%s9257_s1 + $0xd34] ss:$8 sps:$4 sm:$0xff]  }
 0x19d   :  { %3948 = vmatprep.subr.bf16.mxu0 %v6817_v63  ;;  %v6857_v28 = vld [vmem:[%s9257_s1 + $0xd30] ss:$8 sps:$4 sm:$0xff]   ;;  %v6862_v29 = vld [vmem:[%s9257_s1 + $0xd44] ss:$8 sps:$4 sm:$0xff]   ;;  %v6860_v30 = vld [vmem:[%s9257_s1 + $0xd40] ss:$8 sps:$4 sm:$0xff]  }
 0x19e   :  { %v6865_v31 = vld [vmem:[%s9257_s1 + $0xd54] ss:$8 sps:$4 sm:$0xff]   ;;  %v6863_v32 = vld [vmem:[%s9257_s1 + $0xd50] ss:$8 sps:$4 sm:$0xff]   ;;  %v6868_v33 = vld [vmem:[%s9257_s1 + $0xd64] ss:$8 sps:$4 sm:$0xff]  }
 0x19f   :  { %v6866_v34 = vld [vmem:[%s9257_s1 + $0xd60] ss:$8 sps:$4 sm:$0xff]   ;;  %v6871_v35 = vld [vmem:[%s9257_s1 + $0xd74] ss:$8 sps:$4 sm:$0xff]   ;;  %v6869_v36 = vld [vmem:[%s9257_s1 + $0xd70] ss:$8 sps:$4 sm:$0xff]  }
 0x1a0   :  { %3949 = vmatpush1.bf16.msra.mxu0 %v6815_v0  ;;  %v6874_v37 = vld [vmem:[%s9257_s1 + $0xd84] ss:$8 sps:$4 sm:$0xff]   ;;  %v6872_v38 = vld [vmem:[%s9257_s1 + $0xd80] ss:$8 sps:$4 sm:$0xff]   ;;  %v6877_v39 = vld [vmem:[%s9257_s1 + $0xd94] ss:$8 sps:$4 sm:$0xff]  }
 0x1a1   :  { %3950 = vmatprep.subr.bf16.mxu0 %v6820_v1  ;;  %v6875_v40 = vld [vmem:[%s9257_s1 + $0xd90] ss:$8 sps:$4 sm:$0xff]   ;;  %v6880_v41 = vld [vmem:[%s9257_s1 + $0xda4] ss:$8 sps:$4 sm:$0xff]   ;;  %v6878_v42 = vld [vmem:[%s9257_s1 + $0xda0] ss:$8 sps:$4 sm:$0xff]  }
 0x1a2   :  { %v6883_v43 = vld [vmem:[%s9257_s1 + $0xdb4] ss:$8 sps:$4 sm:$0xff]   ;;  %v6881_v44 = vld [vmem:[%s9257_s1 + $0xdb0] ss:$8 sps:$4 sm:$0xff]   ;;  %v6886_v45 = vld [vmem:[%s9257_s1 + $0xdc4] ss:$8 sps:$4 sm:$0xff]  }
 0x1a3   :  { %v6884_v46 = vld [vmem:[%s9257_s1 + $0xdc0] ss:$8 sps:$4 sm:$0xff]   ;;  %v6889_v47 = vld [vmem:[%s9257_s1 + $0xdd4] ss:$8 sps:$4 sm:$0xff]   ;;  %v6887_v48 = vld [vmem:[%s9257_s1 + $0xdd0] ss:$8 sps:$4 sm:$0xff]  }
 0x1a4   :  { %3951 = vmatpush1.bf16.msra.mxu0 %v6818_v2  ;;  %v6894_v49 = vld [vmem:[%s9257_s1 + $0xde4] ss:$8 sps:$4 sm:$0xff]   ;;  %v6892_v50 = vld [vmem:[%s9257_s1 + $0xde0] ss:$8 sps:$4 sm:$0xff]   ;;  %v6898_v51 = vld [vmem:[%s9257_s1 + $0xdf4] ss:$8 sps:$4 sm:$0xff]  }
 0x1a5   :  { %3952 = vmatprep.subr.bf16.mxu0 %v6823_v3  ;;  %v6896_v52 = vld [vmem:[%s9257_s1 + $0xdf0] ss:$8 sps:$4 sm:$0xff]   ;;  %v6904_v53 = vld [vmem:[%s9257_s1 + $0xe04] ss:$8 sps:$4 sm:$0xff]   ;;  %v6899_v54 = vld [vmem:[%s9256_s0 + $0x68] ss:$120 sps:$4 sm:$0xff]  }
 0x1a6   :  { %v6902_v55 = vld [vmem:[%s9257_s1 + $0xe00] ss:$8 sps:$4 sm:$0xff]   ;;  %v6944_v56 = vld [vmem:[%s9256_s0 + $0x15c] ss:$120 sps:$4 sm:$0xff]   ;;  %v6905_v58 = vld [vmem:[%s9257_s1 + $0xe10] ss:$8 sps:$4 sm:$0xff]  }
 0x1a7   :  { %v6907_v57 = vld [vmem:[%s9257_s1 + $0xe14] ss:$8 sps:$4 sm:$0xff]   ;;  %v6910_v59 = vld [vmem:[%s9257_s1 + $0xe24] ss:$8 sps:$4 sm:$0xff]   ;;  %v6946_v60 = vld [vmem:[%s9256_s0 + $0x158] ss:$120 sps:$4 sm:$0xff]  }
 0x1a8   :  { %3953 = vmatpush1.bf16.msra.mxu0 %v6821_v4  ;;  %v6908_v61 = vld [vmem:[%s9257_s1 + $0xe20] ss:$8 sps:$4 sm:$0xff]   ;;  %v6955_v62 = vld [vmem:[%s9256_s0 + $0x74] ss:$120 sps:$4 sm:$0xff]   ;;  %v6911_v0 = vld [vmem:[%s9257_s1 + $0xe30] ss:$8 sps:$4 sm:$0xff]  }
 0x1a9   :  { %3954 = vmatprep.subr.bf16.mxu0 %v6826_v5  ;;  %v6913_v63 = vld [vmem:[%s9257_s1 + $0xe34] ss:$8 sps:$4 sm:$0xff]   ;;  %v6916_v1 = vld [vmem:[%s9257_s1 + $0xe44] ss:$8 sps:$4 sm:$0xff]   ;;  %v6914_v2 = vld [vmem:[%s9257_s1 + $0xe40] ss:$8 sps:$4 sm:$0xff]  }
 0x1aa   :  { %v6919_v3 = vld [vmem:[%s9257_s1 + $0xe54] ss:$8 sps:$4 sm:$0xff]   ;;  %v6917_v4 = vld [vmem:[%s9257_s1 + $0xe50] ss:$8 sps:$4 sm:$0xff]   ;;  %v6922_v5 = vld [vmem:[%s9257_s1 + $0xe64] ss:$8 sps:$4 sm:$0xff]  }
 0x1ab   :  { %vm7160_vm0 = vmmov 0   ;;  %vm4154_vm1 = vcmask 1040384   ;;  %s7161_s16 = smov 64   ;;  %s7162_s18 = smov 96   ;;  %vm4309_vm2 = vcmask 261120  }
 0x1ac   :  { %3955 = vmatpush1.bf16.msra.mxu0 %v6824_v6  ;;  %v6920_v6 = vld [vmem:[%s9257_s1 + $0xe60] ss:$8 sps:$4 sm:$0xff]   ;;  %s7163_s19 = smov 32  }
 0x1ad   :  { %3956 = vmatprep.subr.bf16.mxu0 %v6829_v7  ;;  %v6925_v7 = vld [vmem:[%s9257_s1 + $0xe74] ss:$8 sps:$4 sm:$0xff]  }
 0x1b0   :  { %3957 = vmatpush1.bf16.msra.mxu0 %v6827_v8  ;;  %v6923_v8 = vld [vmem:[%s9257_s1 + $0xe70] ss:$8 sps:$4 sm:$0xff]  }
 0x1b1   :  { %3958 = vmatprep.subr.bf16.mxu0 %v6832_v9  ;;  %v6928_v9 = vld [vmem:[%s9257_s1 + $0xe84] ss:$8 sps:$4 sm:$0xff]  }
 0x1b4   :  { %3959 = vmatpush1.bf16.msra.mxu0 %v6830_v10  ;;  %v6926_v10 = vld [vmem:[%s9257_s1 + $0xe80] ss:$8 sps:$4 sm:$0xff]  }
 0x1b5   :  { %3960 = vmatprep.subr.bf16.mxu0 %v6835_v11  ;;  %v6931_v11 = vld [vmem:[%s9257_s1 + $0xe94] ss:$8 sps:$4 sm:$0xff]  }
 0x1b8   :  { %3961 = vmatpush1.bf16.msra.mxu0 %v6833_v12  ;;  %v6929_v12 = vld [vmem:[%s9257_s1 + $0xe90] ss:$8 sps:$4 sm:$0xff]  }
 0x1b9   :  { %3962 = vmatprep.subr.bf16.mxu0 %v6840_v13  ;;  %v6934_v13 = vld [vmem:[%s9257_s1 + $0xea4] ss:$8 sps:$4 sm:$0xff]  }
 0x1bc   :  { %3963 = vmatpush1.bf16.msra.mxu0 %v6838_v14  ;;  %v6932_v14 = vld [vmem:[%s9257_s1 + $0xea0] ss:$8 sps:$4 sm:$0xff]  }
 0x1bd   :  { %3964 = vmatprep.subr.bf16.mxu0 %v6844_v15  ;;  %v6937_v15 = vld [vmem:[%s9257_s1 + $0xeb4] ss:$8 sps:$4 sm:$0xff]  }
 0x1c0   :  { %3965 = vmatpush1.bf16.msra.mxu0 %v6842_v16  ;;  %v6935_v16 = vld [vmem:[%s9257_s1 + $0xeb0] ss:$8 sps:$4 sm:$0xff]  }
 0x1c1   :  { %3987 = vmatprep.subr.bf16.mxu0 %v6850_v17  ;;  %v6940_v17 = vld [vmem:[%s9257_s1 + $0xec4] ss:$8 sps:$4 sm:$0xff]  }
 0x1c3   :  { %3967 = vmatmul.mubr.bf16.vlgmr.msra.gmra.mrb[0].mxu0 %v6845_v18  ;;  %v6938_v18 = vld [vmem:[%s9257_s1 + $0xec0] ss:$8 sps:$4 sm:$0xff]  }
 0x1c4   :  { %3988 = vmatpush1.bf16.msra.mxu0 %v6848_v19  ;;  %3976 = vmatprep.mubr.bf16.mxu0 %v6890_v20  ;;  %v6943_v19 = vld [vmem:[%s9257_s1 + $0xed4] ss:$8 sps:$4 sm:$0xff]   ;;  %v6941_v20 = vld [vmem:[%s9257_s1 + $0xed0] ss:$8 sps:$4 sm:$0xff]  }
 0x1c5   :  { %3989 = vmatprep.subr.bf16.mxu0 %v6853_v21  ;;  %v6949_v21 = vld [vmem:[%s9257_s1 + $0xee4] ss:$8 sps:$4 sm:$0xff]  }
 0x1c8   :  { %3990 = vmatpush1.bf16.msra.mxu0 %v6851_v22  ;;  %v6947_v22 = vld [vmem:[%s9257_s1 + $0xee0] ss:$8 sps:$4 sm:$0xff]  }
 0x1c9   :  { %3991 = vmatprep.subr.bf16.mxu0 %v6856_v23  ;;  %v6952_v23 = vld [vmem:[%s9257_s1 + $0xef4] ss:$8 sps:$4 sm:$0xff]  }
 0x1cb   :  { %3977 = vmatmul.mubr.bf16.gmra.mrb[4].mxu0 %v6895_v24  ;;  %v6950_v24 = vld [vmem:[%s9257_s1 + $0xef0] ss:$8 sps:$4 sm:$0xff]  }
 0x1cc   :  { %3992 = vmatpush1.bf16.msra.mxu0 %v6854_v25  ;;  %4019 = vmatprep.mubr.bf16.mxu0 %v6901_v26  ;;  %v6953_v25 = vld [vmem:[%s9256_s0 + $0x70] ss:$120 sps:$4 sm:$0xff]   ;;  %v6956_v26 = vld [vmem:[%s9256_s0 + $0x164] ss:$120 sps:$4 sm:$0xff]  }
 0x1cd   :  { %3993 = vmatprep.subr.bf16.mxu0 %v6859_v27  ;;  %v6958_v27 = vld [vmem:[%s9256_s0 + $0x160] ss:$120 sps:$4 sm:$0xff]  }
 0x1d0   :  { %3994 = vmatpush1.bf16.msra.mxu0 %v6857_v28 }
 0x1d1   :  { %3995 = vmatprep.subr.bf16.mxu0 %v6862_v29 }
 0x1d4   :  { %3996 = vmatpush1.bf16.msra.mxu0 %v6860_v30 }
 0x1d5   :  { %3997 = vmatprep.subr.bf16.mxu0 %v6865_v31 }
 0x1d8   :  { %3998 = vmatpush1.bf16.msra.mxu0 %v6863_v32 }
 0x1d9   :  { %3999 = vmatprep.subr.bf16.mxu0 %v6868_v33 }
 0x1dc   :  { %4000 = vmatpush1.bf16.msra.mxu0 %v6866_v34 }
 0x1dd   :  { %4001 = vmatprep.subr.bf16.mxu0 %v6871_v35 }
 0x1e0   :  { %4002 = vmatpush1.bf16.msra.mxu0 %v6869_v36  ;;  %v6959_v36 = vld [vmem:[%s9259_s3] sm:$0xff]  }
 0x1e1   :  { %4003 = vmatprep.subr.bf16.mxu0 %v6874_v37  ;;  %v7159_v37 = vmov 0.0  }
 0x1e2   :  { %6016 = vmatprep.subr.bf16.mxu1 %v7159_v37  ;;  %6020 = vmatprep.mubr.msk.f32.mxu1 %vm7160_vm0, %v7159_v37 }
 0x1e4   :  { %4004 = vmatpush1.bf16.msra.mxu0 %v6872_v38  ;;  %v6960_v38 = vld [vmem:[%s9259_s3 + $0x8] sm:$0xff]  }
 0x1e5   :  { %4005 = vmatprep.subr.bf16.mxu0 %v6877_v39  ;;  %v6961_v39 = vld [vmem:[%s9259_s3 + $0x10] sm:$0xff]  }
 0x1e8   :  { %4006 = vmatpush1.bf16.msra.mxu0 %v6875_v40  ;;  %v6962_v40 = vld [vmem:[%s9259_s3 + $0x18] sm:$0xff]  }
 0x1e9   :  { %4007 = vmatprep.subr.bf16.mxu0 %v6880_v41  ;;  %v6963_v41 = vld [vmem:[%s9259_s3 + $0x20] sm:$0xff]  }
 0x1ec   :  { %4008 = vmatpush1.bf16.msra.mxu0 %v6878_v42  ;;  %v6964_v42 = vld [vmem:[%s9259_s3 + $0x28] sm:$0xff]  }
 0x1ed   :  { %4009 = vmatprep.subr.bf16.mxu0 %v6883_v43  ;;  %v6965_v43 = vld [vmem:[%s9259_s3 + $0x30] sm:$0xff]  }
 0x1f0   :  { %4010 = vmatpush1.bf16.msra.mxu0 %v6881_v44  ;;  %v6966_v44 = vld [vmem:[%s9259_s3 + $0x38] sm:$0xff]  }
 0x1f1   :  { %4011 = vmatprep.subr.bf16.mxu0 %v6886_v45  ;;  %v588_v45 = vlaneseq }
 0x1f4   :  { %4012 = vmatpush1.bf16.msra.mxu0 %v6884_v46  ;;  %v8890_v46 = vshrl.u32 %v588_v45, 7 }
 0x1f5   :  { %4013 = vmatprep.subr.bf16.mxu0 %v6889_v47 }
 0x1f6   :  { %v8893_v47 = vsub.s32 0, %v8890_v46 }
 0x1f8   :  { %4014 = vmatpush1.bf16.msra.mxu0 %v6887_v48  ;;  %v586_v48 = vld [vmem:[%s9258_s2] sm:$0x3] }
 0x1f9   :  { %4015 = vmatprep.subr.bf16.mxu0 %v6894_v49  ;;  %v8899_v49 = vsub.s32 1, %v8890_v46 }
 0x1fc   :  { %4016 = vmatpush1.bf16.msra.mxu0 %v6892_v50  ;;  %v591_v50 = vrot.slane %v586_v48, %v8893_v47 }
 0x1fd   :  { %4017 = vmatprep.subr.bf16.mxu0 %v6898_v51  ;;  %v595_v51 = vrot.slane %v586_v48, %v8899_v49 }
 0x200   :  { %4018 = vmatpush1.bf16.msra.mxu0 %v6896_v52 }
 0x201   :  { %4040 = vmatprep.subr.bf16.mxu0 %v6904_v53 }
 0x203   :  { %4020 = vmatmul.mubr.bf16.vlgmr.msra.gmra.mrb[0].mxu0 %v6899_v54 }
 0x204   :  { %4041 = vmatpush1.bf16.msra.mxu0 %v6902_v55  ;;  %4029 = vmatprep.mubr.bf16.mxu0 %v6944_v56 }
 0x205   :  { %4042 = vmatprep.subr.bf16.mxu0 %v6907_v57 }
 0x208   :  { %4043 = vmatpush1.bf16.msra.mxu0 %v6905_v58 }
 0x209   :  { %4044 = vmatprep.subr.bf16.mxu0 %v6910_v59 }
 0x20b   :  { %4030 = vmatmul.mubr.bf16.gmra.mrb[4].mxu0 %v6946_v60 }
 0x20c   :  { %4045 = vmatpush1.bf16.msra.mxu0 %v6908_v61  ;;  %4072 = vmatprep.mubr.bf16.mxu0 %v6955_v62 }
 0x20d   :  { %4046 = vmatprep.subr.bf16.mxu0 %v6913_v63 }
 0x210   :  { %4047 = vmatpush1.bf16.msra.mxu0 %v6911_v0 }
 0x211   :  { %4048 = vmatprep.subr.bf16.mxu0 %v6916_v1 }
 0x214   :  { %4049 = vmatpush1.bf16.msra.mxu0 %v6914_v2 }
 0x215   :  { %4050 = vmatprep.subr.bf16.mxu0 %v6919_v3 }
 0x218   :  { %4051 = vmatpush1.bf16.msra.mxu0 %v6917_v4 }
 0x219   :  { %4052 = vmatprep.subr.bf16.mxu0 %v6922_v5 }
 0x21c   :  { %4053 = vmatpush1.bf16.msra.mxu0 %v6920_v6 }
 0x21d   :  { %4054 = vmatprep.subr.bf16.mxu0 %v6925_v7 }
 0x220   :  { %4055 = vmatpush1.bf16.msra.mxu0 %v6923_v8 }
 0x221   :  { %4056 = vmatprep.subr.bf16.mxu0 %v6928_v9 }
 0x224   :  { %4057 = vmatpush1.bf16.msra.mxu0 %v6926_v10 }
 0x225   :  { %4058 = vmatprep.subr.bf16.mxu0 %v6931_v11 }
 0x228   :  { %4059 = vmatpush1.bf16.msra.mxu0 %v6929_v12 }
 0x229   :  { %4060 = vmatprep.subr.bf16.mxu0 %v6934_v13 }
 0x22c   :  { %4061 = vmatpush1.bf16.msra.mxu0 %v6932_v14 }
 0x22d   :  { %4062 = vmatprep.subr.bf16.mxu0 %v6937_v15 }
 0x230   :  { %4063 = vmatpush1.bf16.msra.mxu0 %v6935_v16 }
 0x231   :  { %4064 = vmatprep.subr.bf16.mxu0 %v6940_v17 }
 0x234   :  { %4065 = vmatpush1.bf16.msra.mxu0 %v6938_v18 }
 0x235   :  { %4066 = vmatprep.subr.bf16.mxu0 %v6943_v19 }
 0x238   :  { %4067 = vmatpush1.bf16.msra.mxu0 %v6941_v20 }
 0x239   :  { %4068 = vmatprep.subr.bf16.mxu0 %v6949_v21 }
 0x23c   :  { %4069 = vmatpush1.bf16.msra.mxu0 %v6947_v22 }
 0x23d   :  { %4070 = vmatprep.subr.bf16.mxu0 %v6952_v23 }
 0x240   :  { %4071 = vmatpush1.bf16.msra.mxu0 %v6950_v24 }
 0x241   :  { %5997 = vmatprep.subr.bf16.mxu0 %v7159_v37 }
 0x243   :  { %4073 = vmatmul.mubr.bf16.vlgmr.msra.gmra.mrb[0].mxu0 %v6953_v25 }
 0x244   :  { %4082 = vmatprep.mubr.bf16.mxu0 %v6956_v26  ;;  %5998 = vmatpush3.bf16.msra.mxu0 %v6959_v36 }
 0x245   :  { %5999 = vmatprep.subr.bf16.mxu0 %v7159_v37 }
 0x248   :  { %6000 = vmatpush3.bf16.msra.mxu0 %v6960_v38 }
 0x249   :  { %6001 = vmatprep.subr.bf16.mxu0 %v7159_v37 }
 0x24b   :  { %4083 = vmatmul.mubr.bf16.gmra.mrb[4].mxu0 %v6958_v27 }
 0x24c   :  { %6002 = vmatpush3.bf16.msra.mxu0 %v6961_v39  ;;  %6013 = vmatprep.mubr.msk.f32.mxu0 %vm7160_vm0, %v7159_v37 }
 0x24d   :  { %6003 = vmatprep.subr.bf16.mxu0 %v7159_v37 }
 0x250   :  { %6004 = vmatpush3.bf16.msra.mxu0 %v6962_v40 }
 0x251   :  { %6005 = vmatprep.subr.bf16.mxu0 %v7159_v37 }
 0x254   :  { %6006 = vmatpush3.bf16.msra.mxu0 %v6963_v41 }
 0x255   :  { %v3597_v28 = vpop.f32.mrb[0].mxu1  ;;  %6007 = vmatprep.subr.bf16.mxu0 %v7159_v37 }
 0x256   :  { %v3599_v29 = vpop.f32.mrb[1].mxu1  ;;  %v6023_v52 = vadd.f32 %v3597_v28, %v591_v50 }
 0x257   :  { %v3601_v30 = vpop.f32.mrb[2].mxu1  ;;  %v6025_v53 = vadd.f32 %v3599_v29, %v595_v51 }
 0x258   :  { %v3603_v31 = vpop.f32.mrb[3].mxu1  ;;  %6008 = vmatpush3.bf16.msra.mxu0 %v6964_v42  ;;  %v6027_v55 = vadd.f32 %v3601_v30, %v591_v50 }
 0x259   :  { %6009 = vmatprep.subr.bf16.mxu0 %v7159_v37  ;;  %v6029_v58 = vadd.f32 %v3603_v31, %v595_v51 }
 0x25c   :  { %6010 = vmatpush3.bf16.msra.mxu0 %v6965_v43 }
 0x25d   :  { %v3607_v32 = vpop.f32.mrb[4].mxu1  ;;  %6011 = vmatprep.subr.bf16.mxu0 %v7159_v37 }
 0x25e   :  { %v3609_v33 = vpop.f32.mrb[5].mxu1  ;;  %v6031_v3 = vadd.f32 %v3607_v32, %v591_v50 }
 0x25f   :  { %v3611_v34 = vpop.f32.mrb[6].mxu1  ;;  %v6033_v4 = vadd.f32 %v3609_v33, %v595_v51 }
 0x260   :  { %v3613_v35 = vpop.f32.mrb[7].mxu1  ;;  %6012 = vmatpush3.bf16.msra.mxu0 %v6966_v44  ;;  %v6035_v8 = vadd.f32 %v3611_v34, %v591_v50 }
 0x261   :  { %v6037_v11 = vadd.f32 %v3613_v35, %v595_v51 }
 0x316   :  { %v4074_v54 = vpop.f32.mrb[0].mxu0 }
 0x317   :  { %v6024_v56 = vadd.f32 %v6023_v52, %v4074_v54  ;;  %v4076_v57 = vpop.f32.mrb[1].mxu0 }
 0x318   :  { %v6026_v59 = vadd.f32 %v6025_v53, %v4076_v57  ;;  %v4078_v60 = vpop.f32.mrb[2].mxu0 }
 0x319   :  { %v6028_v61 = vadd.f32 %v6027_v55, %v4078_v60  ;;  %v4080_v62 = vpop.f32.mrb[3].mxu0  ;;  %v4093_v29 = vmax.f32 %v6024_v56, 0.0 }
 0x31a   :  { %v4101_v63 = vmax.f32 %v6026_v59, 0.0  ;;  %v6030_v0 = vadd.f32 %v6029_v58, %v4080_v62 }
 0x31b   :  { %v4094_v32 = vmax.f32 %v6028_v61, 0.0  ;;  %v4097_v34 = vadd.f32 %v6024_v56, %v4093_v29 }
 0x31c   :  { %v4105_v1 = vadd.f32 %v6026_v59, %v4101_v63  ;;  %v4102_v2 = vmax.f32 %v6030_v0, 0.0 }
 0x31d   :  { %v4098_v38 = vadd.f32 %v6028_v61, %v4094_v32 }
 0x31e   :  { %v5826_v5 = vmul.f32 -1.442695, %v4105_v1  ;;  %v4106_v6 = vadd.f32 %v6030_v0, %v4102_v2  ;;  %v4084_v7 = vpop.f32.mrb[4].mxu0 }
 0x31f   :  { %v6032_v9 = vadd.f32 %v6031_v3, %v4084_v7  ;;  %v4086_v10 = vpop.f32.mrb[5].mxu0 }
 0x320   :  { %7103 = vpow2.f32 %v5826_v5  ;;  %v5827_v12 = vmul.f32 -1.442695, %v4106_v6  ;;  %v6034_v13 = vadd.f32 %v6033_v4, %v4086_v10  ;;  %v4088_v14 = vpop.f32.mrb[6].mxu0  ;;  %v5830_v5 = vld [vmem:[%s9260_s4] ss:$0 sm:$0xff] }
 0x321   :  { %v6036_v15 = vadd.f32 %v6035_v8, %v4088_v14  ;;  %v4090_v16 = vpop.f32.mrb[7].mxu0  ;;  %v4095_v41 = vmax.f32 %v6032_v9, 0.0 }
 0x322   :  { %7105 = vpow2.f32 %v5827_v12  ;;  %v4103_v17 = vmax.f32 %v6034_v13, 0.0  ;;  %v6038_v18 = vadd.f32 %v6037_v11, %v4090_v16  ;;  %v6967_v16 = vld [vmem:[%s9261_s5] sm:$0xff]  }
 0x323   :  { %v4096_v42 = vmax.f32 %v6036_v15, 0.0  ;;  %v4099_v44 = vadd.f32 %v6032_v9, %v4095_v41  ;;  %6017 = vmatpush3.bf16.msra.mxu1 %v6967_v16  ;;  %v6975_v41 = vld [vmem:[%s9265_s9] ss:$16 sps:$4 sm:$0xff]  }
 0x324   :  { %v4107_v19 = vadd.f32 %v6034_v13, %v4103_v17  ;;  %v4104_v20 = vmax.f32 %v6038_v18, 0.0  ;;  %v6968_v17 = vld [vmem:[%s9261_s5 + $0x8] sm:$0xff]   ;;  %6018 = vmatprep.subr.bf16.mxu1 %v7159_v37 }
 0x325   :  { %v4100_v51 = vadd.f32 %v6036_v15, %v4096_v42  ;;  %v6980_v42 = vld [vmem:[%s9265_s9 + $0x24] ss:$16 sps:$4 sm:$0xff]  }
 0x326   :  { %v5828_v21 = vmul.f32 -1.442695, %v4107_v19  ;;  %v4108_v22 = vadd.f32 %v6038_v18, %v4104_v20 }
 0x327   :  { %6019 = vmatpush3.bf16.msra.mxu1 %v6968_v17 }
 0x328   :  { %7107 = vpow2.f32 %v5828_v21  ;;  %v5829_v23 = vmul.f32 -1.442695, %v4108_v22  ;;  %v5840_v22 = vld [vmem:[%s9262_s6] ss:$0 sm:$0xff] }
 0x32a   :  { %v7104_v24 = vpop.eup %7103  ;;  %7109 = vpow2.f32 %v5829_v23 }
 0x32b   :  { %v4121_v25 = vadd.f32 1.0, %v7104_v24 }
 0x32c   :  { %v7106_v26 = vpop.eup %7105 }
 0x32d   :  { %7111 = vrcp.f32 %v4121_v25  ;;  %v4122_v27 = vadd.f32 1.0, %v7106_v26 }
 0x32f   :  { %7113 = vrcp.f32 %v4122_v27 }
 0x332   :  { %v7108_v28 = vpop.eup %7107 }
 0x333   :  { %v4123_v30 = vadd.f32 1.0, %v7108_v28 }
 0x334   :  { %v7110_v31 = vpop.eup %7109 }
 0x335   :  { %7115 = vrcp.f32 %v4123_v30  ;;  %v4124_v33 = vadd.f32 1.0, %v7110_v31 }
 0x337   :  { %v7112_v35 = vpop.eup %7111  ;;  %7117 = vrcp.f32 %v4124_v33  ;;  %v6971_v33 = vld [vmem:[%s9263_s7 + $0x4] ss:$8 sps:$4 sm:$0xff]  }
 0x338   :  { %v4133_v36 = vmul.f32 %v7112_v35, %v4097_v34  ;;  %v6974_v34 = vld [vmem:[%s9263_s7 + $0x14] ss:$8 sps:$4 sm:$0xff]   ;;  %4409 = vmatprep.subr.bf16.mxu1 %v6971_v33  ;;  %v6972_v35 = vld [vmem:[%s9263_s7 + $0x10] ss:$8 sps:$4 sm:$0xff]  }
 0x339   :  { %v7114_v39 = vpop.eup %7113  ;;  %v7044_v33 = vld [vmem:[%s9265_s9 + $0xe8] ss:$16 sps:$4 sm:$0xff]  }
 0x33a   :  { %v4134_v40 = vmul.f32 %v7114_v39, %v4098_v38  ;;  %v6977_v38 = vld [vmem:[%s9265_s9 + $0x4] ss:$16 sps:$4 sm:$0xff]  }
 0x33c   :  { %v4137_v43 = vadd.f32 %v4134_v40, %v4133_v36 }
 0x33e   :  { %v4138_v45 = vrot.slane %v4137_v43, 4 }
 0x33f   :  { %v7116_v48 = vpop.eup %7115 }
 0x340   :  { %v4135_v50 = vmul.f32 %v7116_v48, %v4099_v44  ;;  %v4139_v52 = vadd.f32 %v4138_v45, %v4137_v43  ;;  %v6978_v44 = vld [vmem:[%s9265_s9 + $0x20] ss:$16 sps:$4 sm:$0xff]   ;;  %v6983_v45 = vld [vmem:[%s9265_s9 + $0x44] ss:$16 sps:$4 sm:$0xff]  }
 0x341   :  { %v7118_v53 = vpop.eup %7117  ;;  %v6981_v48 = vld [vmem:[%s9265_s9 + $0x40] ss:$16 sps:$4 sm:$0xff]  }
 0x342   :  { %v4136_v54 = vmul.f32 %v7118_v53, %v4100_v51  ;;  %v4140_v55 = vrot.slane %v4139_v52, 2  ;;  %v6984_v51 = vld [vmem:[%s9265_s9 + $0x60] ss:$16 sps:$4 sm:$0xff]  }
 0x343   :  { %v6987_v53 = vld [vmem:[%s9265_s9 + $0x80] ss:$16 sps:$4 sm:$0xff]  }
 0x344   :  { %v4146_v57 = vadd.f32 %v4136_v54, %v4135_v50  ;;  %v4141_v56 = vadd.f32 %v4140_v55, %v4139_v52  ;;  %v6986_v50 = vld [vmem:[%s9265_s9 + $0x64] ss:$16 sps:$4 sm:$0xff]   ;;  %v6990_v55 = vld [vmem:[%s9265_s9 + $0xa0] ss:$16 sps:$4 sm:$0xff]  }
 0x345   :  { %v6989_v52 = vld [vmem:[%s9265_s9 + $0x84] ss:$16 sps:$4 sm:$0xff]  }
 0x346   :  { %v4147_v58 = vrot.slane %v4146_v57, 4  ;;  %v4142_v60 = vrot.slane %v4141_v56, 1  ;;  %v6992_v54 = vld [vmem:[%s9265_s9 + $0xa4] ss:$16 sps:$4 sm:$0xff]  }
 0x348   :  { %v4148_v59 = vadd.f32 %v4147_v58, %v4146_v57  ;;  %v4143_v63 = vadd.f32 %v4142_v60, %v4141_v56  ;;  %v6995_v57 = vld [vmem:[%s9265_s9 + $0xc4] ss:$16 sps:$4 sm:$0xff]   ;;  %v6993_v56 = vld [vmem:[%s9265_s9 + $0xc0] ss:$16 sps:$4 sm:$0xff]  }
 0x349   :  { %v6998_v58 = vld [vmem:[%s9265_s9 + $0xe4] ss:$16 sps:$4 sm:$0xff]  }
 0x34a   :  { %v4149_v61 = vrot.slane %v4148_v59, 2  ;;  %v4145_v2 = vmul.f32 0.0625, %v4143_v63  ;;  %v7001_v60 = vld [vmem:[%s9265_s9 + $0x104] ss:$16 sps:$4 sm:$0xff]   ;;  %v7002_v63 = vld [vmem:[%s9265_s9 + $0x120] ss:$16 sps:$4 sm:$0xff]  }
 0x34c   :  { %v4150_v62 = vadd.f32 %v4149_v61, %v4148_v59  ;;  %v6996_v59 = vld [vmem:[%s9265_s9 + $0xe0] ss:$16 sps:$4 sm:$0xff]  }
 0x34d   :  { %v6999_v61 = vld [vmem:[%s9265_s9 + $0x100] ss:$16 sps:$4 sm:$0xff]  }
 0x34e   :  { %v4151_v0 = vrot.slane %v4150_v62, 1 }
 0x350   :  { %v4152_v1 = vadd.f32 %v4151_v0, %v4150_v62  ;;  %v7004_v62 = vld [vmem:[%s9265_s9 + $0x124] ss:$16 sps:$4 sm:$0xff]  }
 0x351   :  { %v7007_v0 = vld [vmem:[%s9265_s9 + $0x144] ss:$16 sps:$4 sm:$0xff]  }
 0x352   :  { %v4153_v3 = vmul.f32 0.0625, %v4152_v1  ;;  %v7005_v1 = vld [vmem:[%s9265_s9 + $0x140] ss:$16 sps:$4 sm:$0xff]  }
 0x354   :  { %v4155_v4 = vsel %vm4154_vm1, %v4145_v2, %v4153_v3  ;;  %v7010_v2 = vld [vmem:[%s9265_s9 + $0x164] ss:$16 sps:$4 sm:$0xff]   ;;  %v7008_v3 = vld [vmem:[%s9265_s9 + $0x160] ss:$16 sps:$4 sm:$0xff]  }
 0x355   :  { %6014 = vmatmul.mubr.f32.vlgmr.msra.gmra.mrb[8].mxu0 %v4155_v4  ;;  %v7013_v4 = vld [vmem:[%s9265_s9 + $0x184] ss:$16 sps:$4 sm:$0xff]  }
 0x428   :  { %v4261_v6 = vpop.f32.mrb[8].mxu0 }
 0x429   :  { %v4262_v7 = vadd.f32 %v5830_v5, %v4261_v6  ;;  %v6015_v8 = vpop.f32.mrb[9].mxu0  ;;  %v7011_v5 = vld [vmem:[%s9265_s9 + $0x180] ss:$16 sps:$4 sm:$0xff]   ;;  %v7016_v6 = vld [vmem:[%s9265_s9 + $0x1a4] ss:$16 sps:$4 sm:$0xff]  }
 0x42a   :  { %v7019_v8 = vld [vmem:[%s9265_s9 + $0x1c4] ss:$16 sps:$4 sm:$0xff]  }
 0x42b   :  { %7119 = vtanh.f32 %v4262_v7  ;;  %v5839_v10 = vmul.f32 -1.442695, %v4262_v7  ;;  %v7014_v7 = vld [vmem:[%s9265_s9 + $0x1a0] ss:$16 sps:$4 sm:$0xff]  }
 0x42d   :  { %7121 = vpow2.f32 %v5839_v10  ;;  %v7022_v10 = vld [vmem:[%s9265_s9 + $0x1e4] ss:$16 sps:$4 sm:$0xff]  }
 0x435   :  { %v7120_v9 = vpop.eup %7119 }
 0x436   :  { %4273 = vrot.lane.b32.xlu0 %v7120_v9, %s7161_s16  ;;  %v7017_v9 = vld [vmem:[%s9265_s9 + $0x1c0] ss:$16 sps:$4 sm:$0xff]  }
 0x437   :  { %v7122_v11 = vpop.eup %7121 }
 0x438   :  { %v4268_v12 = vadd.f32 1.0, %v7122_v11  ;;  %v7020_v11 = vld [vmem:[%s9265_s9 + $0x1e0] ss:$16 sps:$4 sm:$0xff]  }
 0x43a   :  { %7123 = vrcp.f32 %v4268_v12  ;;  %v7025_v12 = vld [vmem:[%s9265_s9 + $0xc] ss:$16 sps:$4 sm:$0xff]  }
 0x444   :  { %v7124_v13 = vpop.eup %7123 }
 0x4a8   :  { %v4274_v14 = vpop.permute.xlu0 %4273 }
 0x4a9   :  { %v4276_v15 = vmul.f32 %v7124_v13, %v4274_v14 }
 0x4ab   :  { %7125 = vtanh.f32 %v4276_v15 }
 0x4b5   :  { %v7126_v18 = vpop.eup %7125 }
 0x4b6   :  { %4279 = vrot.lane.b32.xlu0 %v7126_v18, %s7162_s18 }
 0x528   :  { %v4280_v19 = vpop.permute.xlu0 %4279 }
 0x529   :  { %v4282_v20 = vmul.f32 %v7124_v13, %v4280_v19  ;;  %v4372_v13 = vld [vmem:[%s9264_s8] sm:$0x3]  ;;  %v7023_v19 = vld [vmem:[%s9265_s9 + $0x8] ss:$16 sps:$4 sm:$0xff]  }
 0x52a   :  { %v4381_v14 = vrot.slane %v4372_v13, %v8899_v49  ;;  %v4377_v15 = vrot.slane %v4372_v13, %v8893_v47  ;;  %v7088_v13 = vld [vmem:[%s9267_s11 + $0x80] sm:$0xff]  }
 0x52b   :  { %4295 = vrot.lane.b32.xlu1 %v4282_v20, %s7163_s19 }
 0x59d   :  { %v4296_v21 = vpop.permute.xlu1 %4295 }
 0x59e   :  { %6021 = vmatmul.mubr.msk.f32.vlgmr.msra.gmra.mrb[8].mxu1 %vm4309_vm2, %v4296_v21  ;;  %v7028_v21 = vld [vmem:[%s9265_s9 + $0x2c] ss:$16 sps:$4 sm:$0xff]  }
 0x59f   :  { %4441 = vmatprep.mubr.f32.mxu1 %v7159_v37  ;;  %v6969_v37 = vld [vmem:[%s9263_s7] ss:$8 sps:$4 sm:$0xff]  }
 0x5a0   :  { %4410 = vmatpush1.bf16.msra.mxu1 %v6969_v37  ;;  %v7046_v37 = vld [vmem:[%s9265_s9 + $0xec] ss:$16 sps:$4 sm:$0xff]  }
 0x5a1   :  { %4411 = vmatprep.subr.bf16.mxu1 %v6974_v34  ;;  %v7049_v34 = vld [vmem:[%s9265_s9 + $0x10c] ss:$16 sps:$4 sm:$0xff]  }
 0x5a4   :  { %4412 = vmatpush1.bf16.msra.mxu1 %v6972_v35  ;;  %v7047_v35 = vld [vmem:[%s9265_s9 + $0x108] ss:$16 sps:$4 sm:$0xff]  }
 0x5a5   :  { %4854 = vmatprep.subr.bf16.mxu1 %v6977_v38  ;;  %v7050_v38 = vld [vmem:[%s9265_s9 + $0x128] ss:$16 sps:$4 sm:$0xff]  }
 0x671   :  { %v4346_v23 = vpop.f32.mrb[8].mxu1 }
 0x672   :  { %v4347_v24 = vadd.f32 %v5840_v22, %v4346_v23  ;;  %v6022_v25 = vpop.f32.mrb[9].mxu1  ;;  %v7026_v22 = vld [vmem:[%s9265_s9 + $0x28] ss:$16 sps:$4 sm:$0xff]   ;;  %v7031_v23 = vld [vmem:[%s9265_s9 + $0x4c] ss:$16 sps:$4 sm:$0xff]  }
 0x673   :  { %v7034_v25 = vld [vmem:[%s9265_s9 + $0x6c] ss:$16 sps:$4 sm:$0xff]  }
 0x674   :  { %7127 = vtanh.f32 %v4347_v24  ;;  %v5844_v27 = vmul.f32 -1.442695, %v4347_v24  ;;  %v7029_v24 = vld [vmem:[%s9265_s9 + $0x48] ss:$16 sps:$4 sm:$0xff]  }
 0x676   :  { %7129 = vpow2.f32 %v5844_v27  ;;  %v7037_v27 = vld [vmem:[%s9265_s9 + $0x8c] ss:$16 sps:$4 sm:$0xff]  }
 0x67e   :  { %v7128_v26 = vpop.eup %7127 }
 0x67f   :  { %4358 = vrot.lane.b32.xlu1 %v7128_v26, %s7161_s16  ;;  %v7032_v26 = vld [vmem:[%s9265_s9 + $0x68] ss:$16 sps:$4 sm:$0xff]  }
 0x680   :  { %v7130_v28 = vpop.eup %7129 }
 0x681   :  { %v4353_v29 = vadd.f32 1.0, %v7130_v28  ;;  %v7035_v28 = vld [vmem:[%s9265_s9 + $0x88] ss:$16 sps:$4 sm:$0xff]  }
 0x683   :  { %7131 = vrcp.f32 %v4353_v29  ;;  %v7040_v29 = vld [vmem:[%s9265_s9 + $0xac] ss:$16 sps:$4 sm:$0xff]  }
 0x68d   :  { %v7132_v30 = vpop.eup %7131 }
 0x6f1   :  { %v4359_v31 = vpop.permute.xlu1 %4358 }
 0x6f2   :  { %v4361_v32 = vmul.f32 %v7132_v30, %v4359_v31  ;;  %v7043_v31 = vld [vmem:[%s9265_s9 + $0xcc] ss:$16 sps:$4 sm:$0xff]  }
 0x6f4   :  { %7133 = vtanh.f32 %v4361_v32  ;;  %v7041_v32 = vld [vmem:[%s9265_s9 + $0xc8] ss:$16 sps:$4 sm:$0xff]  }
 0x6fe   :  { %v7134_v36 = vpop.eup %7133 }
 0x6ff   :  { %4364 = vrot.lane.b32.xlu0 %v7134_v36, %s7162_s18  ;;  %v7052_v36 = vld [vmem:[%s9265_s9 + $0x12c] ss:$16 sps:$4 sm:$0xff]  }
 0x771   :  { %v4365_v39 = vpop.permute.xlu0 %4364 }
 0x772   :  { %v4367_v40 = vmul.f32 %v7132_v30, %v4365_v39  ;;  %v7038_v30 = vld [vmem:[%s9265_s9 + $0xa8] ss:$16 sps:$4 sm:$0xff]   ;;  %v7055_v39 = vld [vmem:[%s9265_s9 + $0x14c] ss:$16 sps:$4 sm:$0xff]  }
 0x774   :  { %4385 = vrot.lane.b32.xlu1 %v4367_v40, %s7163_s19  ;;  %v7053_v40 = vld [vmem:[%s9265_s9 + $0x148] ss:$16 sps:$4 sm:$0xff]  }
 0x7e6   :  { %v4386_v43 = vpop.permute.xlu1 %4385 }
 0x7e7   :  { %5849 = vmatmul.mubr.msk.f32.vlgmr.msra.gmra.mrb[10].mxu1 %vm4309_vm2, %v4386_v43  ;;  %v7061_v43 = vld [vmem:[%s9265_s9 + $0x18c] ss:$16 sps:$4 sm:$0xff]  }
 0x7e8   :  { %4855 = vmatpush1.bf16.msra.mxu1 %v6975_v41  ;;  %v7058_v41 = vld [vmem:[%s9265_s9 + $0x16c] ss:$16 sps:$4 sm:$0xff]  }
 0x7e9   :  { %4856 = vmatprep.subr.bf16.mxu1 %v6980_v42  ;;  %v7056_v42 = vld [vmem:[%s9265_s9 + $0x168] ss:$16 sps:$4 sm:$0xff]  }
 0x7ec   :  { %4857 = vmatpush1.bf16.msra.mxu1 %v6978_v44  ;;  %v7059_v44 = vld [vmem:[%s9265_s9 + $0x188] ss:$16 sps:$4 sm:$0xff]  }
 0x7ed   :  { %4858 = vmatprep.subr.bf16.mxu1 %v6983_v45  ;;  %v7064_v45 = vld [vmem:[%s9265_s9 + $0x1ac] ss:$16 sps:$4 sm:$0xff]  }
 0x7f0   :  { %4859 = vmatpush1.bf16.msra.mxu1 %v6981_v48  ;;  %v7062_v48 = vld [vmem:[%s9265_s9 + $0x1a8] ss:$16 sps:$4 sm:$0xff]  }
 0x7f1   :  { %4860 = vmatprep.subr.bf16.mxu1 %v6986_v50  ;;  %v7067_v50 = vld [vmem:[%s9265_s9 + $0x1cc] ss:$16 sps:$4 sm:$0xff]  }
 0x7f4   :  { %4861 = vmatpush1.bf16.msra.mxu1 %v6984_v51  ;;  %v7065_v51 = vld [vmem:[%s9265_s9 + $0x1c8] ss:$16 sps:$4 sm:$0xff]  }
 0x7f5   :  { %4862 = vmatprep.subr.bf16.mxu1 %v6989_v52  ;;  %v7070_v52 = vld [vmem:[%s9265_s9 + $0x1ec] ss:$16 sps:$4 sm:$0xff]  }
 0x7f8   :  { %4863 = vmatpush1.bf16.msra.mxu1 %v6987_v53  ;;  %v7068_v53 = vld [vmem:[%s9265_s9 + $0x1e8] ss:$16 sps:$4 sm:$0xff]  }
 0x7f9   :  { %4864 = vmatprep.subr.bf16.mxu1 %v6992_v54  ;;  %v7071_v54 = vld [vmem:[%s9267_s11 + $0x40] sm:$0xff]  }
 0x7fc   :  { %4865 = vmatpush1.bf16.msra.mxu1 %v6990_v55  ;;  %v7072_v55 = vld [vmem:[%s9267_s11] sm:$0xff]  }
 0x7fd   :  { %4866 = vmatprep.subr.bf16.mxu1 %v6995_v57  ;;  %v7073_v57 = vld [vmem:[%s9267_s11 + $0x48] sm:$0xff]  }
 0x800   :  { %4867 = vmatpush1.bf16.msra.mxu1 %v6993_v56  ;;  %v7074_v56 = vld [vmem:[%s9267_s11 + $0x8] sm:$0xff]  }
 0x801   :  { %4868 = vmatprep.subr.bf16.mxu1 %v6998_v58  ;;  %v7075_v58 = vld [vmem:[%s9267_s11 + $0x50] sm:$0xff]  }
 0x804   :  { %4869 = vmatpush1.bf16.msra.mxu1 %v6996_v59  ;;  %v7076_v59 = vld [vmem:[%s9267_s11 + $0x10] sm:$0xff]  }
 0x805   :  { %4870 = vmatprep.subr.bf16.mxu1 %v7001_v60  ;;  %v7077_v60 = vld [vmem:[%s9267_s11 + $0x58] sm:$0xff]  }
 0x808   :  { %4871 = vmatpush1.bf16.msra.mxu1 %v6999_v61  ;;  %v7078_v61 = vld [vmem:[%s9267_s11 + $0x18] sm:$0xff]  }
 0x809   :  { %4872 = vmatprep.subr.bf16.mxu1 %v7004_v62  ;;  %v7079_v62 = vld [vmem:[%s9267_s11 + $0x60] sm:$0xff]  }
 0x80c   :  { %4873 = vmatpush1.bf16.msra.mxu1 %v7002_v63  ;;  %v7080_v63 = vld [vmem:[%s9267_s11 + $0x20] sm:$0xff]  }
 0x80d   :  { %4874 = vmatprep.subr.bf16.mxu1 %v7007_v0  ;;  %v7081_v0 = vld [vmem:[%s9267_s11 + $0x68] sm:$0xff]  }
 0x810   :  { %4875 = vmatpush1.bf16.msra.mxu1 %v7005_v1  ;;  %v7082_v1 = vld [vmem:[%s9267_s11 + $0x28] sm:$0xff]  }
 0x811   :  { %4876 = vmatprep.subr.bf16.mxu1 %v7010_v2  ;;  %v7083_v2 = vld [vmem:[%s9267_s11 + $0x70] sm:$0xff]  }
 0x814   :  { %4877 = vmatpush1.bf16.msra.mxu1 %v7008_v3  ;;  %v7084_v3 = vld [vmem:[%s9267_s11 + $0x30] sm:$0xff]  }
 0x815   :  { %4878 = vmatprep.subr.bf16.mxu1 %v7013_v4  ;;  %v7085_v4 = vld [vmem:[%s9267_s11 + $0x78] sm:$0xff]  }
 0x818   :  { %4879 = vmatpush1.bf16.msra.mxu1 %v7011_v5  ;;  %v7086_v5 = vld [vmem:[%s9267_s11 + $0x38] sm:$0xff]  }
 0x819   :  { %4880 = vmatprep.subr.bf16.mxu1 %v7016_v6  ;;  %v7087_v6 = vld [vmem:[%s9267_s11 + $0xc0] sm:$0xff]  }
 0x81c   :  { %4881 = vmatpush1.bf16.msra.mxu1 %v7014_v7  ;;  %v4512_v7 = vld [vmem:[%s9266_s10] sm:$0xf] }
 0x81d   :  { %4882 = vmatprep.subr.bf16.mxu1 %v7019_v8  ;;  %v4521_v8 = vrot.slane %v4512_v7, %v8899_v49  ;;  %v7090_v49 = vld [vmem:[%s9267_s11 + $0x88] sm:$0xff]  }
 0x820   :  { %4883 = vmatpush1.bf16.msra.mxu1 %v7017_v9  ;;  %v4517_v9 = vrot.slane %v4512_v7, %v8893_v47  ;;  %v7091_v47 = vld [vmem:[%s9267_s11 + $0xd0] sm:$0xff]  }
 0x821   :  { %4884 = vmatprep.subr.bf16.mxu1 %v7022_v10 }
 0x824   :  { %4885 = vmatpush1.bf16.msra.mxu1 %v7020_v11 }
 0x825   :  { %4893 = vmatprep.subr.bf16.mxu1 %v7025_v12 }
 0x8ba   :  { %v4443_v16 = vpop.f32.mrb[10].mxu1 }
 0x8bb   :  { %v4445_v17 = vpop.f32.mrb[11].mxu1  ;;  %v9044_v20 = vadd.f32 %v4443_v16, %v4377_v15  ;;  %v7089_v15 = vld [vmem:[%s9267_s11 + $0xc8] sm:$0xff]   ;;  %v7092_v16 = vld [vmem:[%s9267_s11 + $0x90] sm:$0xff]  }
 0x8bc   :  { %v4446_v18 = vadd.f32 %v4445_v17, %v4381_v14  ;;  %v7093_v17 = vld [vmem:[%s9267_s11 + $0xd8] sm:$0xff]  }
 0x8be   :  { %4886 = vmatprep.mubr.f32.mxu1 %v4446_v18 }
 0x8bf   :  { %4887 = vmatmul.mubr.f32.vlgmr.msra.gmra.mrb[12].mxu1 %v9044_v20 }
 0x8c0   :  { %4894 = vmatpush1.bf16.msra.mxu1 %v7023_v19  ;;  %4925 = vmatprep.mubr.f32.mxu1 %v4446_v18  ;;  %v7094_v18 = vld [vmem:[%s9267_s11 + $0x98] sm:$0xff]   ;;  %v7095_v19 = vld [vmem:[%s9267_s11 + $0xe0] sm:$0xff]  }
 0x8c1   :  { %4895 = vmatprep.subr.bf16.mxu1 %v7028_v21  ;;  %v7097_v21 = vld [vmem:[%s9267_s11 + $0xe8] sm:$0xff]  }
 0x8c4   :  { %4896 = vmatpush1.bf16.msra.mxu1 %v7026_v22  ;;  %v7098_v22 = vld [vmem:[%s9267_s11 + $0xa8] sm:$0xff]  }
 0x8c5   :  { %4897 = vmatprep.subr.bf16.mxu1 %v7031_v23  ;;  %v7099_v23 = vld [vmem:[%s9267_s11 + $0xf0] sm:$0xff]  }
 0x8c8   :  { %4898 = vmatpush1.bf16.msra.mxu1 %v7029_v24  ;;  %v7100_v24 = vld [vmem:[%s9267_s11 + $0xb0] sm:$0xff]  }
 0x8c9   :  { %4899 = vmatprep.subr.bf16.mxu1 %v7034_v25  ;;  %v7101_v25 = vld [vmem:[%s9267_s11 + $0xf8] sm:$0xff]  }
 0x8cc   :  { %4900 = vmatpush1.bf16.msra.mxu1 %v7032_v26  ;;  %v7102_v26 = vld [vmem:[%s9267_s11 + $0xb8] sm:$0xff]  }
 0x8cd   :  { %4901 = vmatprep.subr.bf16.mxu1 %v7037_v27  ;;  %v4528_v27 = vsub.s32 3, %v8890_v46 }
 0x8d0   :  { %4902 = vmatpush1.bf16.msra.mxu1 %v7035_v28  ;;  %v4524_v28 = vsub.s32 2, %v8890_v46 }
 0x8d1   :  { %4903 = vmatprep.subr.bf16.mxu1 %v7040_v29  ;;  %v4529_v29 = vrot.slane %v4512_v7, %v4528_v27 }
 0x8d4   :  { %4904 = vmatpush1.bf16.msra.mxu1 %v7038_v30  ;;  %v4525_v30 = vrot.slane %v4512_v7, %v4524_v28 }
 0x8d5   :  { %4905 = vmatprep.subr.bf16.mxu1 %v7043_v31 }
 0x8d8   :  { %4906 = vmatpush1.bf16.msra.mxu1 %v7041_v32 }
 0x8d9   :  { %4907 = vmatprep.subr.bf16.mxu1 %v7046_v37 }
 0x8dc   :  { %4908 = vmatpush1.bf16.msra.mxu1 %v7044_v33 }
 0x8dd   :  { %4909 = vmatprep.subr.bf16.mxu1 %v7049_v34 }
 0x8e0   :  { %4910 = vmatpush1.bf16.msra.mxu1 %v7047_v35 }
 0x8e1   :  { %4911 = vmatprep.subr.bf16.mxu1 %v7052_v36 }
 0x8e4   :  { %4912 = vmatpush1.bf16.msra.mxu1 %v7050_v38  ;;  %v5914_v38 = vld [vmem:[%s9268_s12] ss:$0 sm:$0xff] }
 0x8e5   :  { %4913 = vmatprep.subr.bf16.mxu1 %v7055_v39 }
 0x8e8   :  { %4914 = vmatpush1.bf16.msra.mxu1 %v7053_v40 }
 0x8e9   :  { %4915 = vmatprep.subr.bf16.mxu1 %v7058_v41 }
 0x8ec   :  { %4916 = vmatpush1.bf16.msra.mxu1 %v7056_v42 }
 0x8ed   :  { %4917 = vmatprep.subr.bf16.mxu1 %v7061_v43 }
 0x8f0   :  { %4918 = vmatpush1.bf16.msra.mxu1 %v7059_v44 }
 0x8f1   :  { %4919 = vmatprep.subr.bf16.mxu1 %v7064_v45 }
 0x8f4   :  { %4920 = vmatpush1.bf16.msra.mxu1 %v7062_v48 }
 0x8f5   :  { %4921 = vmatprep.subr.bf16.mxu1 %v7067_v50 }
 0x8f8   :  { %4922 = vmatpush1.bf16.msra.mxu1 %v7065_v51 }
 0x8f9   :  { %4923 = vmatprep.subr.bf16.mxu1 %v7070_v52 }
 0x8fc   :  { %4924 = vmatpush1.bf16.msra.mxu1 %v7068_v53 }
 0x8fd   :  { %5959 = vmatprep.subr.bf16.mxu1 %v7071_v54 }
 0x8ff   :  { %4926 = vmatmul.mubr.f32.vlgmr.msra.gmra.mrb[14].mxu1 %v9044_v20  ;;  %v7096_v20 = vld [vmem:[%s9267_s11 + $0xa0] sm:$0xff]   ;;  %s7164_s11 = smov [#allocation2]  }
 0x900   :  { %5960 = vmatpush3.bf16.msra.mxu1 %v7072_v55  ;;  %s5278_s10 = sshll.u32 %s7164_s11, 4  ;;  %s5279_s10 = int_to_ptr.vmem [resolvable:$true] %s5278_s10 }
 0x901   :  { %5961 = vmatprep.subr.bf16.mxu1 %v7073_v57  ;;  %s7135_s19 = scalar_lea.vmem %s5279_s10, 32  ;;  %p7140_p1 = scmp.lt.s32.totalorder %s5279_s10, %s5279_s10 }
 0x902   :  { %p7136_p0 = scmp.ne.s32.totalorder %s5279_s10, %s7135_s19  ;;  %p7141_p2 = scmp.lt.s32.totalorder %s7135_s19, %s7135_s19 }
 0x904   :  { %5962 = vmatpush3.bf16.msra.mxu1 %v7074_v56  ;;  %p7142_p3 = por %p7141_p2, %p7140_p1 }
 0x905   :  { %5963 = vmatprep.subr.bf16.mxu1 %v7075_v58 }
 0x906   :  { %p7143_p4 = pnand %p7142_p3, %p7136_p0 }
 0x908   :  { %5964 = vmatpush3.bf16.msra.mxu1 %v7076_v59 }
 0x909   :  { %5965 = vmatprep.subr.bf16.mxu1 %v7077_v60 }
 0x90c   :  { %5966 = vmatpush3.bf16.msra.mxu1 %v7078_v61 }
 0x90d   :  { %5967 = vmatprep.subr.bf16.mxu1 %v7079_v62 }
 0x910   :  { %5968 = vmatpush3.bf16.msra.mxu1 %v7080_v63 }
 0x911   :  { %5969 = vmatprep.subr.bf16.mxu1 %v7081_v0 }
 0x914   :  { %5970 = vmatpush3.bf16.msra.mxu1 %v7082_v1 }
 0x915   :  { %5971 = vmatprep.subr.bf16.mxu1 %v7083_v2 }
 0x918   :  { %5972 = vmatpush3.bf16.msra.mxu1 %v7084_v3 }
 0x919   :  { %5973 = vmatprep.subr.bf16.mxu1 %v7085_v4 }
 0x91c   :  { %5974 = vmatpush3.bf16.msra.mxu1 %v7086_v5 }
 0x91d   :  { %5978 = vmatprep.subr.bf16.mxu1 %v7087_v6 }
 0x992   :  { %v4888_v10 = vpop.f32.mrb[12].mxu1 }
 0x993   :  { %v4890_v11 = vpop.f32.mrb[13].mxu1  ;;  %v4889_v14 = vadd.f32 %v4888_v10, %v4517_v9 }
 0x994   :  { %v4891_v12 = vadd.f32 %v4890_v11, %v4521_v8 }
 0x996   :  { %5227 = vmatprep.mubr.f32.mxu1 %v4891_v12 }
 0x997   :  { %5228 = vmatmul.mubr.f32.vlgmr.msra.gmra.mrb[16].mxu1 %v4889_v14 }
 0x998   :  { %5979 = vmatpush3.bf16.msra.mxu1 %v7088_v13 }
 0x999   :  { %5980 = vmatprep.subr.bf16.mxu1 %v7089_v15 }
 0x99c   :  { %5981 = vmatpush3.bf16.msra.mxu1 %v7090_v49 }
 0x99d   :  { %5982 = vmatprep.subr.bf16.mxu1 %v7091_v47 }
 0x9a0   :  { %5983 = vmatpush3.bf16.msra.mxu1 %v7092_v16 }
 0x9a1   :  { %5984 = vmatprep.subr.bf16.mxu1 %v7093_v17 }
 0x9a4   :  { %5985 = vmatpush3.bf16.msra.mxu1 %v7094_v18 }
 0x9a5   :  { %5986 = vmatprep.subr.bf16.mxu1 %v7095_v19 }
 0x9a8   :  { %5987 = vmatpush3.bf16.msra.mxu1 %v7096_v20 }
 0x9a9   :  { %5988 = vmatprep.subr.bf16.mxu1 %v7097_v21 }
 0x9ac   :  { %5989 = vmatpush3.bf16.msra.mxu1 %v7098_v22 }
 0x9ad   :  { %5990 = vmatprep.subr.bf16.mxu1 %v7099_v23 }
 0x9b0   :  { %5991 = vmatpush3.bf16.msra.mxu1 %v7100_v24 }
 0x9b1   :  { %5992 = vmatprep.subr.bf16.mxu1 %v7101_v25 }
 0x9b4   :  { %5993 = vmatpush3.bf16.msra.mxu1 %v7102_v26 }
 0x9d2   :  { %v4927_v31 = vpop.f32.mrb[14].mxu1 }
 0x9d3   :  { %v4929_v32 = vpop.f32.mrb[15].mxu1  ;;  %v4928_v33 = vadd.f32 %v4927_v31, %v4525_v30 }
 0x9d4   :  { %v4930_v37 = vadd.f32 %v4929_v32, %v4529_v29 }
 0x9d6   :  { %5265 = vmatprep.mubr.f32.mxu1 %v4930_v37 }
 0x9d7   :  { %5266 = vmatmul.mubr.f32.vlgmr.msra.gmra.mrb[18].mxu1 %v4928_v33 }
 0xa6a   :  { %v5975_v34 = vpop.f32.mrb[16].mxu1 }
 0xa6b   :  { %v5976_v35 = vpop.f32.mrb[17].mxu1 }
 0xa6c   :  { %v5977_v36 = vadd.f32 %v5976_v35, %v5975_v34 }
 0xa6e   :  { %v5230_v46 = vadd.f32 %v5977_v36, %v5914_v38 }
 0xaaa   :  { %v5994_v39 = vpop.f32.mrb[18].mxu1 }
 0xaab   :  { %v5995_v40 = vpop.f32.mrb[19].mxu1 }
 0xaac   :  { %v5996_v41 = vadd.f32 %v5995_v40, %v5994_v39 }
 0xaae   :  { %v5268_v42 = vadd.f32 %v5996_v41, %v5230_v46 }
 0xab0   :  { %5271 = vst [vmem:[#allocation2] sm:$0x3] %v5268_v42 }
 0xab1   :  { %7146 = shalt.err (!%p7143_p4)
}
 0xab2   :  { %s7147_s12 = scalar_lea.hbm %s9269_s13, 32 }
 0xab3   :  { %p7148_p5 = scmp.ne.s32.totalorder %s9269_s13, %s7147_s12  ;;  %p7151_p6 = scmp.lt.u32.totalorder %s7147_s12, %s9269_s13 }
 0xab5   :  { %p7153_p7 = pnand %p7151_p6, %p7148_p5 }
 0xab7   :  { %7156 = shalt.err (!%p7153_p7)
}
 0xab8   :  { %5281 = dma.vmem_to_hbm [thread:$0]  %s5279_s10, 32, %s9269_s13, [#allocation3]  }
 0xab9   :  { %7157 = dma.done.wait [#allocation3], 32  }
 0xaba   :  { %7158 = vsyncadd [#allocation3], 4294967264 }
 0xabb   :  { %5285 = vsyncpa [#allocation3], 1 }

</bundles_post_ra>
